<compile_context>
chip_gen: v6e
topology: v6e:2x2x1
jax: 0.10.0
libtpu: 0.0.40
codegen_flags: <defaults>
</compile_context>

<pallas_src>
import math
import jax
import jax.numpy as jnp
from jax.experimental import pallas as pl
from jax.experimental.pallas import tpu as pltpu

# ---- small BERT-like config (BertConfig(hidden=768, layers=12, heads=12,
# intermediate=3072) scaled down to keep the demo tiny) ----
HIDDEN = 32
NUM_HEADS = 2
HEAD_DIM = HIDDEN // NUM_HEADS
INTERMEDIATE = 64
NUM_LAYERS = 2
MAX_POS = 64
LN_EPS = 1e-12
MASK_NEG = -1e9

NUM_DISEASES = 30
NUM_AGES = 12
NUM_SEGMENTS = 2
NUM_ADM_LOCS = 5
NUM_DIS_LOCS = 5
NUM_GENDERS = 2
NUM_ETHNICITIES = 4
NUM_INSURANCES = 3
VOCAB_SIZE = (NUM_DISEASES + NUM_AGES + NUM_SEGMENTS + NUM_ADM_LOCS
              + NUM_DIS_LOCS + 2)

# per-layer 1-D params: one sublane row each (lane offset 0 -> no lane rotates)
LVEC_ROWS = 8
LVEC_WIDTH = 128
_ROW_BQKV, _ROW_BO, _ROW_LN1G, _ROW_LN1B = 0, 1, 2, 3
_ROW_B1, _ROW_B2, _ROW_LN2G, _ROW_LN2B = 4, 5, 6, 7

# fused classifier output padded to a full 128-lane row (lane-dense store)
HEAD_PAD = 128


# ------------------------- single-buffer capability probe -------------------------

def _probe_copy_kernel(x_ref, o_ref):
    o_ref[...] = x_ref[...]


def _single_buffer_weights_supported():
    """Check whether pipeline_mode=pl.Buffered(1) lowers on this JAX/TPU."""
    try:
        fn = pl.pallas_call(
            _probe_copy_kernel,
            out_shape=jax.ShapeDtypeStruct((8, 128), jnp.float32),
            grid=(1,),
            in_specs=[pl.BlockSpec((8, 128), lambda i: (0, 0),
                                   pipeline_mode=pl.Buffered(1))],
            out_specs=pl.BlockSpec((8, 128), lambda i: (0, 0)),
        )
        jax.block_until_ready(fn(jnp.zeros((8, 128), jnp.float32)))
        return True
    except Exception:
        return False


_SINGLE_BUFFER_WEIGHTS = _single_buffer_weights_supported()


def _weight_spec(shape):
    """BlockSpec for a grid-invariant weight: constant block index; single
    buffered if the JAX build supports it (halves weight VMEM when scaled)."""
    idx = lambda b: (0,) * len(shape)
    if _SINGLE_BUFFER_WEIGHTS:
        return pl.BlockSpec(shape, idx, pipeline_mode=pl.Buffered(1))
    return pl.BlockSpec(shape, idx)


# ------------------------- in-kernel helpers -------------------------

def _layer_norm(x, gamma, beta, eps=LN_EPS):
    mean = jnp.mean(x, axis=-1, keepdims=True)
    var = jnp.mean(jnp.square(x - mean), axis=-1, keepdims=True)
    return (x - mean) * jax.lax.rsqrt(var + eps) * gamma + beta


def _gelu(x):
    # TODO(synk): HF BERT uses exact erf-GELU; tanh approximation is used here
    # because erf is not guaranteed to lower through Mosaic.
    c = math.sqrt(2.0 / math.pi)
    return 0.5 * x * (1.0 + jnp.tanh(c * (x + 0.044715 * x * x * x)))


def _mm(a, b_bf16):
    # MXU matmul: bf16 operands, f32 accumulation.  (On v5e at these tiny,
    # latency-bound shapes f32 operands would be roughly equivalent; bf16 is
    # kept because it is the right choice once H/I scale to BERT-base.)
    return jnp.dot(a.astype(jnp.bfloat16), b_bf16,
                   preferred_element_type=jnp.float32)


def _split_heads(x):
    # (TB, S, H) -> (NUM_HEADS*TB, S, HEAD_DIM); head-major batch order.
    return jnp.concatenate(
        [x[:, :, h * HEAD_DIM:(h + 1) * HEAD_DIM] for h in range(NUM_HEADS)],
        axis=0)


def _merge_heads(ctx, tb):
    # (NUM_HEADS*TB, S, HEAD_DIM) -> (TB*S, H); head h -> lanes [h*DH,(h+1)*DH)
    parts = [ctx[h * tb:(h + 1) * tb] for h in range(NUM_HEADS)]
    merged = jnp.concatenate(parts, axis=-1)                 # (TB, S, H)
    return merged.reshape(tb * merged.shape[1], HIDDEN)


# ------------------------- fused Pallas kernel -------------------------

def behrt_fused_kernel(emb_ref, mask_ref, extra_ref, embln_ref,
                       wqkv_ref, wo_ref, w1_ref, w2_ref, lvec_ref,
                       wh_ref, bh_ref, out_ref):
    TB, S, H = emb_ref.shape           # TB batch rows per grid step
    BS = TB * S
    NH, DH = NUM_HEADS, HEAD_DIM

    # ---- BERT embedding LayerNorm on the whole (TB*S, H) token slab ----
    embln = embln_ref[...]                               # (2, H) f32
    x2 = emb_ref[...].reshape(BS, H)                     # (BS, H) f32
    x2 = _layer_norm(x2, embln[0:1, :], embln[1:2, :])

    # ---- additive attention mask, tiled to the head-batched layout once ----
    mask = mask_ref[...]                                 # (TB, 1, S)
    mask_bh = jnp.concatenate([mask] * NH, axis=0)       # (NH*TB, 1, S)

    scale = 1.0 / math.sqrt(DH)

    # ---- encoder layers (activations stay resident in VMEM) ----
    # TODO(synk): at real depth (L=12, H=768) move layers onto an "arbitrary"
    # grid axis (weights index_map l -> layer l, activations in a VMEM
    # accumulator) so weights stream through VMEM instead of being fully
    # resident + unrolled.
    for l in range(NUM_LAYERS):
        wqkv = wqkv_ref[l]             # (H, 3H)  bf16
        wo = wo_ref[l]                 # (H, H)   bf16
        w1 = w1_ref[l]                 # (H, I)   bf16
        w2 = w2_ref[l]                 # (I, H)   bf16
        vec = lvec_ref[l]              # (8, 128) f32, one param per sublane row
        bqkv = vec[_ROW_BQKV:_ROW_BQKV + 1, 0:3 * H]
        bo = vec[_ROW_BO:_ROW_BO + 1, 0:H]
        ln1_g = vec[_ROW_LN1G:_ROW_LN1G + 1, 0:H]
        ln1_b = vec[_ROW_LN1B:_ROW_LN1B + 1, 0:H]
        b1 = vec[_ROW_B1:_ROW_B1 + 1, 0:INTERMEDIATE]
        b2 = vec[_ROW_B2:_ROW_B2 + 1, 0:H]
        ln2_g = vec[_ROW_LN2G:_ROW_LN2G + 1, 0:H]
        ln2_b = vec[_ROW_LN2B:_ROW_LN2B + 1, 0:H]

        # fused Q/K/V projection: one (TB*S, H) @ (H, 3H) MXU push
        qkv = _mm(x2, wqkv) + bqkv                        # (BS, 3H) f32
        q3 = qkv[:, 0:H].reshape(TB, S, H)
        k3 = qkv[:, H:2 * H].reshape(TB, S, H)
        v3 = qkv[:, 2 * H:3 * H].reshape(TB, S, H)

        # head-batched attention: all heads of all TB rows in ONE pair of
        # batched einsums (no per-head matmul loop / unroll).
        qh = _split_heads(q3).astype(jnp.bfloat16)        # (NH*TB, S, DH)
        kh = _split_heads(k3).astype(jnp.bfloat16)
        vh = _split_heads(v3).astype(jnp.bfloat16)
        scores = jnp.einsum('bqd,bkd->bqk', qh, kh,
                            preferred_element_type=jnp.float32) * scale
        scores = scores + mask_bh
        scores = scores - jnp.max(scores, axis=-1, keepdims=True)
        probs = jnp.exp(scores)
        probs = probs * pl.reciprocal(jnp.sum(probs, axis=-1, keepdims=True),
                                      approx=True)
        ctx = jnp.einsum('bqk,bkd->bqd', probs.astype(jnp.bfloat16), vh,
                         preferred_element_type=jnp.float32)  # (NH*TB, S, DH)

        # one full-width output projection instead of per-head matmuls
        attn = _mm(_merge_heads(ctx, TB), wo) + bo          # (BS, H)
        h1 = _layer_norm(x2 + attn, ln1_g, ln1_b)

        # feed-forward
        ff = _gelu(_mm(h1, w1) + b1)
        x2 = _layer_norm(h1 + _mm(ff, w2) + b2, ln2_g, ln2_b)

    # ---- heads: CLS row + extra BEHRT embeddings, fused 3-way classifier ----
    cls = x2.reshape(TB, S, H)[:, 0, :] + extra_ref[...].reshape(TB, H)  # (TB,H)
    logits = _mm(cls, wh_ref[...]) + bh_ref[...]          # (TB, 128) lane-dense
    out_ref[...] = logits.reshape(TB, 1, HEAD_PAD)


# ------------------------- wrapper -------------------------

def _choose_batch_tile(B, S, target_rows=256):
    """Smallest divisor of B whose token slab reaches `target_rows` MXU rows
    (256 fills a v6e/v7x MXU push; v5e only needs 128); falls back to B.
    NOTE(v7x): at real batch sizes cap the tile at B // 2 so the "parallel"
    batch grid keeps both TensorCores busy."""
    for d in range(1, B + 1):
        if B % d == 0 and d * S >= target_rows:
            return d
    return B


def _flop_estimate(B, S):
    H, I = HIDDEN, INTERMEDIATE
    tokens = B * S
    per_layer = (2 * tokens * H * 3 * H                      # fused QKV proj
                 + 4 * B * NUM_HEADS * S * S * HEAD_DIM      # scores + context
                 + 2 * tokens * H * H                        # output proj
                 + 4 * tokens * H * I)                       # FFN (2 matmuls)
    flops = NUM_LAYERS * per_layer + 2 * B * H * HEAD_PAD    # + classifiers
    transcendentals = NUM_LAYERS * (B * NUM_HEADS * S * S    # softmax exp
                                    + tokens * I)            # GELU tanh
    return int(flops), int(transcendentals)


def run_behrt(emb, mask_add, extra_cls, p):
    B, S, H = emb.shape
    tb = _choose_batch_tile(B, S)
    grid = (B // tb,)

    act_specs = [
        pl.BlockSpec((tb, S, H), lambda b: (b, 0, 0)),       # emb
        pl.BlockSpec((tb, 1, S), lambda b: (b, 0, 0)),       # additive mask
        pl.BlockSpec((tb, 1, H), lambda b: (b, 0, 0)),       # extra CLS embeds
    ]
    weight_specs = [
        _weight_spec((2, H)),                                # emb LN (g, b)
        _weight_spec((NUM_LAYERS, H, 3 * H)),                # Wqkv
        _weight_spec((NUM_LAYERS, H, H)),                    # Wo
        _weight_spec((NUM_LAYERS, H, INTERMEDIATE)),         # W1
        _weight_spec((NUM_LAYERS, INTERMEDIATE, H)),         # W2
        _weight_spec((NUM_LAYERS, LVEC_ROWS, LVEC_WIDTH)),   # biases / LN vecs
        _weight_spec((H, HEAD_PAD)),                         # classifier W (padded)
        _weight_spec((1, HEAD_PAD)),                         # classifier b (padded)
    ]
    args = (emb, mask_add, extra_cls, p['emb_ln'], p['wqkv'], p['wo'],
            p['w1'], p['w2'], p['lvec'], p['wh'], p['bh'])

    flops, transcendentals = _flop_estimate(B, S)
    bytes_accessed = int(sum(a.size * a.dtype.itemsize for a in args)
                         + B * HEAD_PAD * 4)

    out = pl.pallas_call(
        behrt_fused_kernel,
        out_shape=jax.ShapeDtypeStruct((B, 1, HEAD_PAD), jnp.float32),
        grid=grid,
        in_specs=act_specs + weight_specs,
        out_specs=pl.BlockSpec((tb, 1, HEAD_PAD), lambda b: (b, 0, 0)),
        compiler_params=pltpu.CompilerParams(
            dimension_semantics=("parallel",),     # v7x: 2 TCs split the batch
            vmem_limit_bytes=32 * 1024 * 1024),
        cost_estimate=pl.CostEstimate(
            flops=flops, transcendentals=transcendentals,
            bytes_accessed=bytes_accessed),
    )(*args)
    return out[:, 0, :3]                           # (B, 3): mortality, los, mech


# ------------------------- parameter init / packing -------------------------

def init_params(key):
    keys = jax.random.split(key, 64)
    it = iter(keys)

    def nrm(shape):
        return jax.random.normal(next(it), shape, jnp.float32) * 0.02

    p = {
        'word_emb': nrm((VOCAB_SIZE, HIDDEN)),
        'pos_emb': nrm((MAX_POS, HIDDEN)),
        'type_emb': nrm((2, HIDDEN)),
        'emb_ln_g': jnp.ones((HIDDEN,), jnp.float32),
        'emb_ln_b': jnp.zeros((HIDDEN,), jnp.float32),
        'age_emb': nrm((NUM_AGES, HIDDEN)),
        'seg_emb': nrm((NUM_SEGMENTS, HIDDEN)),
        'adm_emb': nrm((NUM_ADM_LOCS, HIDDEN)),
        'dis_emb': nrm((NUM_DIS_LOCS, HIDDEN)),
        'gen_emb': nrm((NUM_GENDERS, HIDDEN)),
        'eth_emb': nrm((NUM_ETHNICITIES, HIDDEN)),
        'ins_emb': nrm((NUM_INSURANCES, HIDDEN)),
        # classifiers (stored [in, out])
        'w_mort': nrm((HIDDEN, 1)), 'b_mort': jnp.zeros((1,), jnp.float32),
        'w_los': nrm((HIDDEN, 1)), 'b_los': jnp.zeros((1,), jnp.float32),
        'w_mech': nrm((HIDDEN, 1)), 'b_mech': jnp.zeros((1,), jnp.float32),
    }
    layers = []
    for _ in range(NUM_LAYERS):
        layers.append({
            'wq': nrm((HIDDEN, HIDDEN)), 'bq': jnp.zeros((HIDDEN,), jnp.float32),
            'wk': nrm((HIDDEN, HIDDEN)), 'bk': jnp.zeros((HIDDEN,), jnp.float32),
            'wv': nrm((HIDDEN, HIDDEN)), 'bv': jnp.zeros((HIDDEN,), jnp.float32),
            'wo': nrm((HIDDEN, HIDDEN)), 'bo': jnp.zeros((HIDDEN,), jnp.float32),
            'ln1_g': jnp.ones((HIDDEN,), jnp.float32),
            'ln1_b': jnp.zeros((HIDDEN,), jnp.float32),
            'w1': nrm((HIDDEN, INTERMEDIATE)),
            'b1': jnp.zeros((INTERMEDIATE,), jnp.float32),
            'w2': nrm((INTERMEDIATE, HIDDEN)),
            'b2': jnp.zeros((HIDDEN,), jnp.float32),
            'ln2_g': jnp.ones((HIDDEN,), jnp.float32),
            'ln2_b': jnp.zeros((HIDDEN,), jnp.float32),
        })
    p['layers'] = layers
    return p


def pack_params(p):
    """Pack per-layer weights into stacked arrays (bf16 MXU operands); 1-D
    params go one-per-sublane-row into a (L, 8, 128) f32 slab; the 3-way
    classifier is fused and zero-padded to 128 lanes."""
    layers = p['layers']

    def pad_row(v):
        return jnp.pad(v, (0, LVEC_WIDTH - v.shape[0]))

    wqkv = jnp.stack([jnp.concatenate([lp['wq'], lp['wk'], lp['wv']], axis=1)
                      for lp in layers]).astype(jnp.bfloat16)
    wo = jnp.stack([lp['wo'] for lp in layers]).astype(jnp.bfloat16)
    w1 = jnp.stack([lp['w1'] for lp in layers]).astype(jnp.bfloat16)
    w2 = jnp.stack([lp['w2'] for lp in layers]).astype(jnp.bfloat16)
    lvec = jnp.stack([
        jnp.stack([pad_row(jnp.concatenate([lp['bq'], lp['bk'], lp['bv']])),
                   pad_row(lp['bo']),
                   pad_row(lp['ln1_g']), pad_row(lp['ln1_b']),
                   pad_row(lp['b1']), pad_row(lp['b2']),
                   pad_row(lp['ln2_g']), pad_row(lp['ln2_b'])])
        for lp in layers]).astype(jnp.float32)

    wh = jnp.concatenate([p['w_mort'], p['w_los'], p['w_mech']], axis=1)  # (H,3)
    wh = jnp.pad(wh, ((0, 0), (0, HEAD_PAD - wh.shape[1]))).astype(jnp.bfloat16)
    bh = jnp.concatenate([p['b_mort'], p['b_los'], p['b_mech']])
    bh = jnp.pad(bh, (0, HEAD_PAD - bh.shape[0]))[None, :].astype(jnp.float32)

    packed = {
        'wqkv': wqkv, 'wo': wo, 'w1': w1, 'w2': w2, 'lvec': lvec,
        'emb_ln': jnp.stack([p['emb_ln_g'], p['emb_ln_b']]),
        'wh': wh, 'bh': bh,
    }
    for name in ('word_emb', 'pos_emb', 'type_emb', 'age_emb', 'seg_emb',
                 'adm_emb', 'dis_emb', 'gen_emb', 'eth_emb', 'ins_emb'):
        packed[name] = p[name]
    return packed


# ------------------------- forward pass -------------------------

def behrt_forward(params, input_ids, age_ids, segment_ids, admission_loc_ids,
                  discharge_loc_ids, gender_ids, ethnicity_ids, insurance_ids,
                  attention_mask=None):
    if attention_mask is None:
        attention_mask = (input_ids != 0).astype(jnp.int32)

    def clamp(ids, table):
        return jnp.clip(ids, 0, table.shape[0] - 1)

    age_ids = clamp(age_ids, params['age_emb'])
    segment_ids = clamp(segment_ids, params['seg_emb'])
    admission_loc_ids = clamp(admission_loc_ids, params['adm_emb'])
    discharge_loc_ids = clamp(discharge_loc_ids, params['dis_emb'])
    gender_ids = clamp(gender_ids, params['gen_emb'])
    ethnicity_ids = clamp(ethnicity_ids, params['eth_emb'])
    insurance_ids = clamp(insurance_ids, params['ins_emb'])

    B, S = input_ids.shape

    # --- BERT embeddings (table gathers stay in plain JAX) ---
    word = params['word_emb'][input_ids]                        # (B, S, H)
    pos = params['pos_emb'][jnp.arange(S)][None, :, :]          # (1, S, H)
    ttype = params['type_emb'][0][None, None, :]                # token_type_ids=0
    emb = word + pos + ttype

    # additive attention mask, (B, 1, S); -1e9 avoids NaN on fully-padded rows
    mask_add = (1.0 - attention_mask.astype(jnp.float32))[:, None, :] * MASK_NEG

    # extra BEHRT embeddings: the reference adds them to the sequence output
    # post-encoder and only reads the CLS row, so gathering position 0 only
    # is equivalent (1/S the traffic).
    extra_cls = (params['age_emb'][age_ids[:, 0]]
                 + params['seg_emb'][segment_ids[:, 0]]
                 + params['adm_emb'][admission_loc_ids[:, 0]]
                 + params['dis_emb'][discharge_loc_ids[:, 0]]
                 + params['gen_emb'][gender_ids[:, 0]]
                 + params['eth_emb'][ethnicity_ids[:, 0]]
                 + params['ins_emb'][insurance_ids[:, 0]])[:, None, :]  # (B,1,H)

    logits = run_behrt(emb, mask_add, extra_cls, params)        # (B, 3)
    return logits[:, 0:1], logits[:, 1:2], logits[:, 2:3]


# ------------------------- main -------------------------

if __name__ == "__main__":
    key = jax.random.PRNGKey(0)
    pkey, *ikeys = jax.random.split(key, 10)
    params = pack_params(init_params(pkey))

    B, S = 2, 8
    input_ids = jax.random.randint(ikeys[0], (B, S), 1, NUM_DISEASES, jnp.int32)
    input_ids = input_ids.at[:, -1].set(0)   # exercise the attention mask
    age_ids = jax.random.randint(ikeys[1], (B, S), 0, NUM_AGES, jnp.int32)
    segment_ids = jax.random.randint(ikeys[2], (B, S), 0, NUM_SEGMENTS, jnp.int32)
    admission_loc_ids = jax.random.randint(ikeys[3], (B, S), 0, NUM_ADM_LOCS, jnp.int32)
    discharge_loc_ids = jax.random.randint(ikeys[4], (B, S), 0, NUM_DIS_LOCS, jnp.int32)
    gender_ids = jax.random.randint(ikeys[5], (B, S), 0, NUM_GENDERS, jnp.int32)
    ethnicity_ids = jax.random.randint(ikeys[6], (B, S), 0, NUM_ETHNICITIES, jnp.int32)
    insurance_ids = jax.random.randint(ikeys[7], (B, S), 0, NUM_INSURANCES, jnp.int32)

    fwd = jax.jit(behrt_forward)
    logits_mortality, logits_los, logits_mech = fwd(
        params, input_ids, age_ids, segment_ids, admission_loc_ids,
        discharge_loc_ids, gender_ids, ethnicity_ids, insurance_ids)

    jax.block_until_ready((logits_mortality, logits_los, logits_mech))
    assert logits_mortality.shape == (B, 1)
    assert logits_los.shape == (B, 1)
    assert logits_mech.shape == (B, 1)
    print("KERNEL_OK")
</pallas_src>

<mosaic_0001>
module attributes {stable_mosaic.version = 11 : i64} {
  func.func @_probe_copy_kernel(%arg0: i32, %arg1: memref<8x128xf32, #tpu.memory_space<vmem>>, %arg2: memref<8x128xf32, #tpu.memory_space<vmem>>) attributes {dimension_semantics = [#tpu.dimension_semantics<arbitrary>], iteration_bounds = array<i64: 1>, scalar_prefetch = 0 : i64, scratch_operands = 0 : i64, tpu.core_type = #tpu.core_type<tc>, window_params = [{pipeline_mode = #tpu.pipeline_mode<synchronous>, transform_indices = @transform_0, window_bounds = array<i64: 8, 128>}, {pipeline_mode = #tpu.pipeline_mode<synchronous>, transform_indices = @transform_1, window_bounds = array<i64: 8, 128>}]} {
    %c0 = arith.constant 0 : index
    %c0_0 = arith.constant 0 : index
    %0 = vector.load %arg1[%c0, %c0_0] : memref<8x128xf32, #tpu.memory_space<vmem>>, vector<8x128xf32>
    %c0_1 = arith.constant 0 : index
    %c0_2 = arith.constant 0 : index
    %1 = vector.load %arg2[%c0_1, %c0_2] : memref<8x128xf32, #tpu.memory_space<vmem>>, vector<8x128xf32>
    tpu.vector_store %arg2[%c0_1, %c0_2], %0 {strides = array<i32>} : memref<8x128xf32, #tpu.memory_space<vmem>>, vector<8x128xf32>,
    return
  }
  func.func @transform_0(%arg0: i32) -> (i32, i32) {
    %c0_i32 = arith.constant 0 : i32
    %c0_i32_0 = arith.constant 0 : i32
    %c0_i32_1 = arith.constant 0 : i32
    return %c0_i32, %c0_i32_0 : i32, i32
  }
  func.func @transform_1(%arg0: i32) -> (i32, i32) {
    %c0_i32 = arith.constant 0 : i32
    %c0_i32_0 = arith.constant 0 : i32
    %c0_i32_1 = arith.constant 0 : i32
    return %c0_i32, %c0_i32_0 : i32, i32
  }
}

module attributes {stable_mosaic.version = 11 : i64} {
  func.func @behrt_fused_kernel(%arg0: i32, %arg1: memref<2x8x32xf32, #tpu.memory_space<vmem>>, %arg2: memref<2x1x8xf32, #tpu.memory_space<vmem>>, %arg3: memref<2x1x32xf32, #tpu.memory_space<vmem>>, %arg4: memref<2x32xf32, #tpu.memory_space<vmem>>, %arg5: memref<2x32x96xbf16, #tpu.memory_space<vmem>>, %arg6: memref<2x32x32xbf16, #tpu.memory_space<vmem>>, %arg7: memref<2x32x64xbf16, #tpu.memory_space<vmem>>, %arg8: memref<2x64x32xbf16, #tpu.memory_space<vmem>>, %arg9: memref<2x8x128xf32, #tpu.memory_space<vmem>>, %arg10: memref<32x128xbf16, #tpu.memory_space<vmem>>, %arg11: memref<1x128xf32, #tpu.memory_space<vmem>>, %arg12: memref<2x1x128xf32, #tpu.memory_space<vmem>>) attributes {dimension_semantics = [#tpu.dimension_semantics<parallel>], iteration_bounds = array<i64: 1>, scalar_prefetch = 0 : i64, scratch_operands = 0 : i64, tpu.core_type = #tpu.core_type<tc>, window_params = [{transform_indices = @transform_0, window_bounds = array<i64: 2, 8, 32>}, {transform_indices = @transform_1, window_bounds = array<i64: 2, 1, 8>}, {transform_indices = @transform_2, window_bounds = array<i64: 2, 1, 32>}, {pipeline_mode = #tpu.pipeline_mode<synchronous>, transform_indices = @transform_3, window_bounds = array<i64: 2, 32>}, {pipeline_mode = #tpu.pipeline_mode<synchronous>, transform_indices = @transform_4, window_bounds = array<i64: 2, 32, 96>}, {pipeline_mode = #tpu.pipeline_mode<synchronous>, transform_indices = @transform_5, window_bounds = array<i64: 2, 32, 32>}, {pipeline_mode = #tpu.pipeline_mode<synchronous>, transform_indices = @transform_6, window_bounds = array<i64: 2, 32, 64>}, {pipeline_mode = #tpu.pipeline_mode<synchronous>, transform_indices = @transform_7, window_bounds = array<i64: 2, 64, 32>}, {pipeline_mode = #tpu.pipeline_mode<synchronous>, transform_indices = @transform_8, window_bounds = array<i64: 2, 8, 128>}, {pipeline_mode = #tpu.pipeline_mode<synchronous>, transform_indices = @transform_9, window_bounds = array<i64: 32, 128>}, {pipeline_mode = #tpu.pipeline_mode<synchronous>, transform_indices = @transform_10, window_bounds = array<i64: 1, 128>}, {transform_indices = @transform_11, window_bounds = array<i64: 2, 1, 128>}]} {
    %c0 = arith.constant 0 : index
    %c0_0 = arith.constant 0 : index
    %0 = vector.load %arg4[%c0, %c0_0] : memref<2x32xf32, #tpu.memory_space<vmem>>, vector<2x32xf32>
    %c0_1 = arith.constant 0 : index
    %c0_2 = arith.constant 0 : index
    %c0_3 = arith.constant 0 : index
    %1 = vector.load %arg1[%c0_1, %c0_2, %c0_3] : memref<2x8x32xf32, #tpu.memory_space<vmem>>, vector<2x8x32xf32>
    %2 = vector.shape_cast %1 : vector<2x8x32xf32> to vector<16x32xf32>
    %3 = vector.extract_strided_slice %0 {offsets = [0, 0], sizes = [1, 32], strides = [1, 1]} : vector<2x32xf32> to vector<1x32xf32>
    %4 = vector.extract_strided_slice %0 {offsets = [1, 0], sizes = [1, 32], strides = [1, 1]} : vector<2x32xf32> to vector<1x32xf32>
    %cst = arith.constant dense<0.000000e+00> : vector<16xf32>
    %5 = vector.multi_reduction <add>, %2, %cst [1] : vector<16x32xf32> to vector<16xf32>
    %6 = vector.shape_cast %5 : vector<16xf32> to vector<16x1xf32>
    %cst_4 = arith.constant 3.200000e+01 : f32
    %7 = vector.broadcast %cst_4 : f32 to vector<16x1xf32>
    %8 = arith.divf %6, %7 : vector<16x1xf32>
    %9 = vector.broadcast %8 : vector<16x1xf32> to vector<16x32xf32>
    %10 = arith.subf %2, %9 : vector<16x32xf32>
    %11 = arith.mulf %10, %10 : vector<16x32xf32>
    %cst_5 = arith.constant dense<0.000000e+00> : vector<16xf32>
    %12 = vector.multi_reduction <add>, %11, %cst_5 [1] : vector<16x32xf32> to vector<16xf32>
    %13 = vector.shape_cast %12 : vector<16xf32> to vector<16x1xf32>
    %cst_6 = arith.constant 3.200000e+01 : f32
    %14 = vector.broadcast %cst_6 : f32 to vector<16x1xf32>
    %15 = arith.divf %13, %14 : vector<16x1xf32>
    %16 = vector.broadcast %8 : vector<16x1xf32> to vector<16x32xf32>
    %17 = arith.subf %2, %16 : vector<16x32xf32>
    %cst_7 = arith.constant 9.99999996E-13 : f32
    %18 = vector.broadcast %cst_7 : f32 to vector<16x1xf32>
    %19 = arith.addf %15, %18 : vector<16x1xf32>
    %20 = math.rsqrt %19 : vector<16x1xf32>
    %21 = vector.broadcast %20 : vector<16x1xf32> to vector<16x32xf32>
    %22 = arith.mulf %17, %21 : vector<16x32xf32>
    %23 = vector.broadcast %3 : vector<1x32xf32> to vector<16x32xf32>
    %24 = arith.mulf %22, %23 : vector<16x32xf32>
    %25 = vector.broadcast %4 : vector<1x32xf32> to vector<16x32xf32>
    %26 = arith.addf %24, %25 : vector<16x32xf32>
    %c0_8 = arith.constant 0 : index
    %c0_9 = arith.constant 0 : index
    %c0_10 = arith.constant 0 : index
    %27 = vector.load %arg2[%c0_8, %c0_9, %c0_10] : memref<2x1x8xf32, #tpu.memory_space<vmem>>, vector<2x1x8xf32>
    %28 = tpu.concatenate %27, %27 in 0 : vector<2x1x8xf32>, vector<2x1x8xf32> -> vector<4x1x8xf32>
    %c0_11 = arith.constant 0 : index
    %c0_12 = arith.constant 0 : index
    %c0_13 = arith.constant 0 : index
    %29 = vector.load %arg5[%c0_11, %c0_12, %c0_13] : memref<2x32x96xbf16, #tpu.memory_space<vmem>>, vector<1x32x96xbf16>
    %30 = vector.shape_cast %29 : vector<1x32x96xbf16> to vector<32x96xbf16>
    %c0_14 = arith.constant 0 : index
    %c0_15 = arith.constant 0 : index
    %c0_16 = arith.constant 0 : index
    %31 = vector.load %arg6[%c0_14, %c0_15, %c0_16] : memref<2x32x32xbf16, #tpu.memory_space<vmem>>, vector<1x32x32xbf16>
    %32 = vector.shape_cast %31 : vector<1x32x32xbf16> to vector<32x32xbf16>
    %c0_17 = arith.constant 0 : index
    %c0_18 = arith.constant 0 : index
    %c0_19 = arith.constant 0 : index
    %33 = vector.load %arg7[%c0_17, %c0_18, %c0_19] : memref<2x32x64xbf16, #tpu.memory_space<vmem>>, vector<1x32x64xbf16>
    %34 = vector.shape_cast %33 : vector<1x32x64xbf16> to vector<32x64xbf16>
    %c0_20 = arith.constant 0 : index
    %c0_21 = arith.constant 0 : index
    %c0_22 = arith.constant 0 : index
    %35 = vector.load %arg8[%c0_20, %c0_21, %c0_22] : memref<2x64x32xbf16, #tpu.memory_space<vmem>>, vector<1x64x32xbf16>
    %36 = vector.shape_cast %35 : vector<1x64x32xbf16> to vector<64x32xbf16>
    %c0_23 = arith.constant 0 : index
    %c0_24 = arith.constant 0 : index
    %c0_25 = arith.constant 0 : index
    %37 = vector.load %arg9[%c0_23, %c0_24, %c0_25] : memref<2x8x128xf32, #tpu.memory_space<vmem>>, vector<1x8x128xf32>
    %38 = vector.shape_cast %37 : vector<1x8x128xf32> to vector<8x128xf32>
    %39 = vector.extract_strided_slice %38 {offsets = [0, 0], sizes = [1, 96], strides = [1, 1]} : vector<8x128xf32> to vector<1x96xf32>
    %40 = vector.extract_strided_slice %38 {offsets = [1, 0], sizes = [1, 32], strides = [1, 1]} : vector<8x128xf32> to vector<1x32xf32>
    %41 = vector.extract_strided_slice %38 {offsets = [2, 0], sizes = [1, 32], strides = [1, 1]} : vector<8x128xf32> to vector<1x32xf32>
    %42 = vector.extract_strided_slice %38 {offsets = [3, 0], sizes = [1, 32], strides = [1, 1]} : vector<8x128xf32> to vector<1x32xf32>
    %43 = vector.extract_strided_slice %38 {offsets = [4, 0], sizes = [1, 64], strides = [1, 1]} : vector<8x128xf32> to vector<1x64xf32>
    %44 = vector.extract_strided_slice %38 {offsets = [5, 0], sizes = [1, 32], strides = [1, 1]} : vector<8x128xf32> to vector<1x32xf32>
    %45 = vector.extract_strided_slice %38 {offsets = [6, 0], sizes = [1, 32], strides = [1, 1]} : vector<8x128xf32> to vector<1x32xf32>
    %46 = vector.extract_strided_slice %38 {offsets = [7, 0], sizes = [1, 32], strides = [1, 1]} : vector<8x128xf32> to vector<1x32xf32>
    %47 = arith.truncf %26 : vector<16x32xf32> to vector<16x32xbf16>
    %cst_26 = arith.constant dense<0.000000e+00> : vector<16x96xf32>
    %48 = tpu.matmul %47, %30, %cst_26 {dimension_numbers = #tpu.dot_dimension_numbers<[1], [0], [0], [1], [0, 0, 1, 1], [], []>} : vector<16x32xbf16>, vector<32x96xbf16>, vector<16x96xf32> -> vector<16x96xf32>
    %49 = vector.broadcast %39 : vector<1x96xf32> to vector<16x96xf32>
    %50 = arith.addf %48, %49 : vector<16x96xf32>
    %51 = vector.extract_strided_slice %50 {offsets = [0, 0], sizes = [16, 32], strides = [1, 1]} : vector<16x96xf32> to vector<16x32xf32>
    %52 = vector.shape_cast %51 : vector<16x32xf32> to vector<2x8x32xf32>
    %53 = vector.extract_strided_slice %50 {offsets = [0, 32], sizes = [16, 32], strides = [1, 1]} : vector<16x96xf32> to vector<16x32xf32>
    %54 = vector.shape_cast %53 : vector<16x32xf32> to vector<2x8x32xf32>
    %55 = vector.extract_strided_slice %50 {offsets = [0, 64], sizes = [16, 32], strides = [1, 1]} : vector<16x96xf32> to vector<16x32xf32>
    %56 = vector.shape_cast %55 : vector<16x32xf32> to vector<2x8x32xf32>
    %57 = vector.extract_strided_slice %52 {offsets = [0, 0, 0], sizes = [2, 8, 16], strides = [1, 1, 1]} : vector<2x8x32xf32> to vector<2x8x16xf32>
    %58 = vector.extract_strided_slice %52 {offsets = [0, 0, 16], sizes = [2, 8, 16], strides = [1, 1, 1]} : vector<2x8x32xf32> to vector<2x8x16xf32>
    %59 = tpu.concatenate %57, %58 in 0 : vector<2x8x16xf32>, vector<2x8x16xf32> -> vector<4x8x16xf32>
    %60 = arith.truncf %59 : vector<4x8x16xf32> to vector<4x8x16xbf16>
    %61 = vector.extract_strided_slice %54 {offsets = [0, 0, 0], sizes = [2, 8, 16], strides = [1, 1, 1]} : vector<2x8x32xf32> to vector<2x8x16xf32>
    %62 = vector.extract_strided_slice %54 {offsets = [0, 0, 16], sizes = [2, 8, 16], strides = [1, 1, 1]} : vector<2x8x32xf32> to vector<2x8x16xf32>
    %63 = tpu.concatenate %61, %62 in 0 : vector<2x8x16xf32>, vector<2x8x16xf32> -> vector<4x8x16xf32>
    %64 = arith.truncf %63 : vector<4x8x16xf32> to vector<4x8x16xbf16>
    %65 = vector.extract_strided_slice %56 {offsets = [0, 0, 0], sizes = [2, 8, 16], strides = [1, 1, 1]} : vector<2x8x32xf32> to vector<2x8x16xf32>
    %66 = vector.extract_strided_slice %56 {offsets = [0, 0, 16], sizes = [2, 8, 16], strides = [1, 1, 1]} : vector<2x8x32xf32> to vector<2x8x16xf32>
    %67 = tpu.concatenate %65, %66 in 0 : vector<2x8x16xf32>, vector<2x8x16xf32> -> vector<4x8x16xf32>
    %68 = arith.truncf %67 : vector<4x8x16xf32> to vector<4x8x16xbf16>
    "tpu.trace_start"() <{level = 10 : i32, message = "bqd,bkd->bqk"}> : () -> ()
    %cst_27 = arith.constant dense<0.000000e+00> : vector<4x8x8xf32>
    %69 = tpu.matmul %60, %64, %cst_27 {dimension_numbers = #tpu.dot_dimension_numbers<[2], [2], [1], [1], [0, 0, 0, 1, 1, 1], [0], [0]>} : vector<4x8x16xbf16>, vector<4x8x16xbf16>, vector<4x8x8xf32> -> vector<4x8x8xf32>
    "tpu.trace_stop"() : () -> ()
    %cst_28 = arith.constant 2.500000e-01 : f32
    %70 = vector.broadcast %cst_28 : f32 to vector<4x8x8xf32>
    %71 = arith.mulf %69, %70 : vector<4x8x8xf32>
    %72 = vector.broadcast %28 : vector<4x1x8xf32> to vector<4x8x8xf32>
    %73 = arith.addf %71, %72 : vector<4x8x8xf32>
    %cst_29 = arith.constant dense<0xFF800000> : vector<4x8xf32>
    %74 = vector.multi_reduction <maximumf>, %73, %cst_29 [2] : vector<4x8x8xf32> to vector<4x8xf32>
    %75 = vector.shape_cast %74 : vector<4x8xf32> to vector<4x8x1xf32>
    %76 = vector.broadcast %75 : vector<4x8x1xf32> to vector<4x8x8xf32>
    %77 = arith.subf %73, %76 : vector<4x8x8xf32>
    %78 = math.exp %77 : vector<4x8x8xf32>
    %cst_30 = arith.constant dense<0.000000e+00> : vector<4x8xf32>
    %79 = vector.multi_reduction <add>, %78, %cst_30 [2] : vector<4x8x8xf32> to vector<4x8xf32>
    %80 = vector.shape_cast %79 : vector<4x8xf32> to vector<4x8x1xf32>
    %81 = tpu.reciprocal %80 {approx = true} : vector<4x8x1xf32> -> vector<4x8x1xf32>
    %82 = vector.broadcast %81 : vector<4x8x1xf32> to vector<4x8x8xf32>
    %83 = arith.mulf %78, %82 : vector<4x8x8xf32>
    %84 = arith.truncf %83 : vector<4x8x8xf32> to vector<4x8x8xbf16>
    "tpu.trace_start"() <{level = 10 : i32, message = "bqk,bkd->bqd"}> : () -> ()
    %cst_31 = arith.constant dense<0.000000e+00> : vector<4x8x16xf32>
    %85 = tpu.matmul %84, %68, %cst_31 {dimension_numbers = #tpu.dot_dimension_numbers<[2], [1], [1], [2], [0, 0, 0, 1, 1, 2], [0], [0]>} : vector<4x8x8xbf16>, vector<4x8x16xbf16>, vector<4x8x16xf32> -> vector<4x8x16xf32>
    "tpu.trace_stop"() : () -> ()
    %86 = vector.extract_strided_slice %85 {offsets = [0, 0, 0], sizes = [2, 8, 16], strides = [1, 1, 1]} : vector<4x8x16xf32> to vector<2x8x16xf32>
    %87 = vector.extract_strided_slice %85 {offsets = [2, 0, 0], sizes = [2, 8, 16], strides = [1, 1, 1]} : vector<4x8x16xf32> to vector<2x8x16xf32>
    %88 = tpu.concatenate %86, %87 in 2 : vector<2x8x16xf32>, vector<2x8x16xf32> -> vector<2x8x32xf32>
    %89 = vector.shape_cast %88 : vector<2x8x32xf32> to vector<16x32xf32>
    %90 = arith.truncf %89 : vector<16x32xf32> to vector<16x32xbf16>
    %cst_32 = arith.constant dense<0.000000e+00> : vector<16x32xf32>
    %91 = tpu.matmul %90, %32, %cst_32 {dimension_numbers = #tpu.dot_dimension_numbers<[1], [0], [0], [1], [0, 0, 1, 1], [], []>} : vector<16x32xbf16>, vector<32x32xbf16>, vector<16x32xf32> -> vector<16x32xf32>
    %92 = vector.broadcast %40 : vector<1x32xf32> to vector<16x32xf32>
    %93 = arith.addf %91, %92 : vector<16x32xf32>
    %94 = arith.addf %26, %93 : vector<16x32xf32>
    %cst_33 = arith.constant dense<0.000000e+00> : vector<16xf32>
    %95 = vector.multi_reduction <add>, %94, %cst_33 [1] : vector<16x32xf32> to vector<16xf32>
    %96 = vector.shape_cast %95 : vector<16xf32> to vector<16x1xf32>
    %cst_34 = arith.constant 3.200000e+01 : f32
    %97 = vector.broadcast %cst_34 : f32 to vector<16x1xf32>
    %98 = arith.divf %96, %97 : vector<16x1xf32>
    %99 = vector.broadcast %98 : vector<16x1xf32> to vector<16x32xf32>
    %100 = arith.subf %94, %99 : vector<16x32xf32>
    %101 = arith.mulf %100, %100 : vector<16x32xf32>
    %cst_35 = arith.constant dense<0.000000e+00> : vector<16xf32>
    %102 = vector.multi_reduction <add>, %101, %cst_35 [1] : vector<16x32xf32> to vector<16xf32>
    %103 = vector.shape_cast %102 : vector<16xf32> to vector<16x1xf32>
    %cst_36 = arith.constant 3.200000e+01 : f32
    %104 = vector.broadcast %cst_36 : f32 to vector<16x1xf32>
    %105 = arith.divf %103, %104 : vector<16x1xf32>
    %106 = vector.broadcast %98 : vector<16x1xf32> to vector<16x32xf32>
    %107 = arith.subf %94, %106 : vector<16x32xf32>
    %cst_37 = arith.constant 9.99999996E-13 : f32
    %108 = vector.broadcast %cst_37 : f32 to vector<16x1xf32>
    %109 = arith.addf %105, %108 : vector<16x1xf32>
    %110 = math.rsqrt %109 : vector<16x1xf32>
    %111 = vector.broadcast %110 : vector<16x1xf32> to vector<16x32xf32>
    %112 = arith.mulf %107, %111 : vector<16x32xf32>
    %113 = vector.broadcast %41 : vector<1x32xf32> to vector<16x32xf32>
    %114 = arith.mulf %112, %113 : vector<16x32xf32>
    %115 = vector.broadcast %42 : vector<1x32xf32> to vector<16x32xf32>
    %116 = arith.addf %114, %115 : vector<16x32xf32>
    %117 = arith.truncf %116 : vector<16x32xf32> to vector<16x32xbf16>
    %cst_38 = arith.constant dense<0.000000e+00> : vector<16x64xf32>
    %118 = tpu.matmul %117, %34, %cst_38 {dimension_numbers = #tpu.dot_dimension_numbers<[1], [0], [0], [1], [0, 0, 1, 1], [], []>} : vector<16x32xbf16>, vector<32x64xbf16>, vector<16x64xf32> -> vector<16x64xf32>
    %119 = vector.broadcast %43 : vector<1x64xf32> to vector<16x64xf32>
    %120 = arith.addf %118, %119 : vector<16x64xf32>
    %cst_39 = arith.constant 5.000000e-01 : f32
    %121 = vector.broadcast %cst_39 : f32 to vector<16x64xf32>
    %122 = arith.mulf %121, %120 : vector<16x64xf32>
    %cst_40 = arith.constant 4.471500e-02 : f32
    %123 = vector.broadcast %cst_40 : f32 to vector<16x64xf32>
    %124 = arith.mulf %123, %120 : vector<16x64xf32>
    %125 = arith.mulf %124, %120 : vector<16x64xf32>
    %126 = arith.mulf %125, %120 : vector<16x64xf32>
    %127 = arith.addf %120, %126 : vector<16x64xf32>
    %cst_41 = arith.constant 0.797884583 : f32
    %128 = vector.broadcast %cst_41 : f32 to vector<16x64xf32>
    %129 = arith.mulf %128, %127 : vector<16x64xf32>
    %130 = math.tanh %129 : vector<16x64xf32>
    %cst_42 = arith.constant 1.000000e+00 : f32
    %131 = vector.broadcast %cst_42 : f32 to vector<16x64xf32>
    %132 = arith.addf %131, %130 : vector<16x64xf32>
    %133 = arith.mulf %122, %132 : vector<16x64xf32>
    %134 = arith.truncf %133 : vector<16x64xf32> to vector<16x64xbf16>
    %cst_43 = arith.constant dense<0.000000e+00> : vector<16x32xf32>
    %135 = tpu.matmul %134, %36, %cst_43 {dimension_numbers = #tpu.dot_dimension_numbers<[1], [0], [0], [1], [0, 0, 1, 1], [], []>} : vector<16x64xbf16>, vector<64x32xbf16>, vector<16x32xf32> -> vector<16x32xf32>
    %136 = arith.addf %116, %135 : vector<16x32xf32>
    %137 = vector.broadcast %44 : vector<1x32xf32> to vector<16x32xf32>
    %138 = arith.addf %136, %137 : vector<16x32xf32>
    %cst_44 = arith.constant dense<0.000000e+00> : vector<16xf32>
    %139 = vector.multi_reduction <add>, %138, %cst_44 [1] : vector<16x32xf32> to vector<16xf32>
    %140 = vector.shape_cast %139 : vector<16xf32> to vector<16x1xf32>
    %cst_45 = arith.constant 3.200000e+01 : f32
    %141 = vector.broadcast %cst_45 : f32 to vector<16x1xf32>
    %142 = arith.divf %140, %141 : vector<16x1xf32>
    %143 = vector.broadcast %142 : vector<16x1xf32> to vector<16x32xf32>
    %144 = arith.subf %138, %143 : vector<16x32xf32>
    %145 = arith.mulf %144, %144 : vector<16x32xf32>
    %cst_46 = arith.constant dense<0.000000e+00> : vector<16xf32>
    %146 = vector.multi_reduction <add>, %145, %cst_46 [1] : vector<16x32xf32> to vector<16xf32>
    %147 = vector.shape_cast %146 : vector<16xf32> to vector<16x1xf32>
    %cst_47 = arith.constant 3.200000e+01 : f32
    %148 = vector.broadcast %cst_47 : f32 to vector<16x1xf32>
    %149 = arith.divf %147, %148 : vector<16x1xf32>
    %150 = vector.broadcast %142 : vector<16x1xf32> to vector<16x32xf32>
    %151 = arith.subf %138, %150 : vector<16x32xf32>
    %cst_48 = arith.constant 9.99999996E-13 : f32
    %152 = vector.broadcast %cst_48 : f32 to vector<16x1xf32>
    %153 = arith.addf %149, %152 : vector<16x1xf32>
    %154 = math.rsqrt %153 : vector<16x1xf32>
    %155 = vector.broadcast %154 : vector<16x1xf32> to vector<16x32xf32>
    %156 = arith.mulf %151, %155 : vector<16x32xf32>
    %157 = vector.broadcast %45 : vector<1x32xf32> to vector<16x32xf32>
    %158 = arith.mulf %156, %157 : vector<16x32xf32>
    %159 = vector.broadcast %46 : vector<1x32xf32> to vector<16x32xf32>
    %160 = arith.addf %158, %159 : vector<16x32xf32>
    %c1 = arith.constant 1 : index
    %c0_49 = arith.constant 0 : index
    %c0_50 = arith.constant 0 : index
    %161 = vector.load %arg5[%c1, %c0_49, %c0_50] : memref<2x32x96xbf16, #tpu.memory_space<vmem>>, vector<1x32x96xbf16>
    %162 = vector.shape_cast %161 : vector<1x32x96xbf16> to vector<32x96xbf16>
    %c1_51 = arith.constant 1 : index
    %c0_52 = arith.constant 0 : index
    %c0_53 = arith.constant 0 : index
    %163 = vector.load %arg6[%c1_51, %c0_52, %c0_53] : memref<2x32x32xbf16, #tpu.memory_space<vmem>>, vector<1x32x32xbf16>
    %164 = vector.shape_cast %163 : vector<1x32x32xbf16> to vector<32x32xbf16>
    %c1_54 = arith.constant 1 : index
    %c0_55 = arith.constant 0 : index
    %c0_56 = arith.constant 0 : index
    %165 = vector.load %arg7[%c1_54, %c0_55, %c0_56] : memref<2x32x64xbf16, #tpu.memory_space<vmem>>, vector<1x32x64xbf16>
    %166 = vector.shape_cast %165 : vector<1x32x64xbf16> to vector<32x64xbf16>
    %c1_57 = arith.constant 1 : index
    %c0_58 = arith.constant 0 : index
    %c0_59 = arith.constant 0 : index
    %167 = vector.load %arg8[%c1_57, %c0_58, %c0_59] : memref<2x64x32xbf16, #tpu.memory_space<vmem>>, vector<1x64x32xbf16>
    %168 = vector.shape_cast %167 : vector<1x64x32xbf16> to vector<64x32xbf16>
    %c1_60 = arith.constant 1 : index
    %c0_61 = arith.constant 0 : index
    %c0_62 = arith.constant 0 : index
    %169 = vector.load %arg9[%c1_60, %c0_61, %c0_62] : memref<2x8x128xf32, #tpu.memory_space<vmem>>, vector<1x8x128xf32>
    %170 = vector.shape_cast %169 : vector<1x8x128xf32> to vector<8x128xf32>
    %171 = vector.extract_strided_slice %170 {offsets = [0, 0], sizes = [1, 96], strides = [1, 1]} : vector<8x128xf32> to vector<1x96xf32>
    %172 = vector.extract_strided_slice %170 {offsets = [1, 0], sizes = [1, 32], strides = [1, 1]} : vector<8x128xf32> to vector<1x32xf32>
    %173 = vector.extract_strided_slice %170 {offsets = [2, 0], sizes = [1, 32], strides = [1, 1]} : vector<8x128xf32> to vector<1x32xf32>
    %174 = vector.extract_strided_slice %170 {offsets = [3, 0], sizes = [1, 32], strides = [1, 1]} : vector<8x128xf32> to vector<1x32xf32>
    %175 = vector.extract_strided_slice %170 {offsets = [4, 0], sizes = [1, 64], strides = [1, 1]} : vector<8x128xf32> to vector<1x64xf32>
    %176 = vector.extract_strided_slice %170 {offsets = [5, 0], sizes = [1, 32], strides = [1, 1]} : vector<8x128xf32> to vector<1x32xf32>
    %177 = vector.extract_strided_slice %170 {offsets = [6, 0], sizes = [1, 32], strides = [1, 1]} : vector<8x128xf32> to vector<1x32xf32>
    %178 = vector.extract_strided_slice %170 {offsets = [7, 0], sizes = [1, 32], strides = [1, 1]} : vector<8x128xf32> to vector<1x32xf32>
    %179 = arith.truncf %160 : vector<16x32xf32> to vector<16x32xbf16>
    %cst_63 = arith.constant dense<0.000000e+00> : vector<16x96xf32>
    %180 = tpu.matmul %179, %162, %cst_63 {dimension_numbers = #tpu.dot_dimension_numbers<[1], [0], [0], [1], [0, 0, 1, 1], [], []>} : vector<16x32xbf16>, vector<32x96xbf16>, vector<16x96xf32> -> vector<16x96xf32>
    %181 = vector.broadcast %171 : vector<1x96xf32> to vector<16x96xf32>
    %182 = arith.addf %180, %181 : vector<16x96xf32>
    %183 = vector.extract_strided_slice %182 {offsets = [0, 0], sizes = [16, 32], strides = [1, 1]} : vector<16x96xf32> to vector<16x32xf32>
    %184 = vector.shape_cast %183 : vector<16x32xf32> to vector<2x8x32xf32>
    %185 = vector.extract_strided_slice %182 {offsets = [0, 32], sizes = [16, 32], strides = [1, 1]} : vector<16x96xf32> to vector<16x32xf32>
    %186 = vector.shape_cast %185 : vector<16x32xf32> to vector<2x8x32xf32>
    %187 = vector.extract_strided_slice %182 {offsets = [0, 64], sizes = [16, 32], strides = [1, 1]} : vector<16x96xf32> to vector<16x32xf32>
    %188 = vector.shape_cast %187 : vector<16x32xf32> to vector<2x8x32xf32>
    %189 = vector.extract_strided_slice %184 {offsets = [0, 0, 0], sizes = [2, 8, 16], strides = [1, 1, 1]} : vector<2x8x32xf32> to vector<2x8x16xf32>
    %190 = vector.extract_strided_slice %184 {offsets = [0, 0, 16], sizes = [2, 8, 16], strides = [1, 1, 1]} : vector<2x8x32xf32> to vector<2x8x16xf32>
    %191 = tpu.concatenate %189, %190 in 0 : vector<2x8x16xf32>, vector<2x8x16xf32> -> vector<4x8x16xf32>
    %192 = arith.truncf %191 : vector<4x8x16xf32> to vector<4x8x16xbf16>
    %193 = vector.extract_strided_slice %186 {offsets = [0, 0, 0], sizes = [2, 8, 16], strides = [1, 1, 1]} : vector<2x8x32xf32> to vector<2x8x16xf32>
    %194 = vector.extract_strided_slice %186 {offsets = [0, 0, 16], sizes = [2, 8, 16], strides = [1, 1, 1]} : vector<2x8x32xf32> to vector<2x8x16xf32>
    %195 = tpu.concatenate %193, %194 in 0 : vector<2x8x16xf32>, vector<2x8x16xf32> -> vector<4x8x16xf32>
    %196 = arith.truncf %195 : vector<4x8x16xf32> to vector<4x8x16xbf16>
    %197 = vector.extract_strided_slice %188 {offsets = [0, 0, 0], sizes = [2, 8, 16], strides = [1, 1, 1]} : vector<2x8x32xf32> to vector<2x8x16xf32>
    %198 = vector.extract_strided_slice %188 {offsets = [0, 0, 16], sizes = [2, 8, 16], strides = [1, 1, 1]} : vector<2x8x32xf32> to vector<2x8x16xf32>
    %199 = tpu.concatenate %197, %198 in 0 : vector<2x8x16xf32>, vector<2x8x16xf32> -> vector<4x8x16xf32>
    %200 = arith.truncf %199 : vector<4x8x16xf32> to vector<4x8x16xbf16>
    "tpu.trace_start"() <{level = 10 : i32, message = "bqd,bkd->bqk"}> : () -> ()
    %cst_64 = arith.constant dense<0.000000e+00> : vector<4x8x8xf32>
    %201 = tpu.matmul %192, %196, %cst_64 {dimension_numbers = #tpu.dot_dimension_numbers<[2], [2], [1], [1], [0, 0, 0, 1, 1, 1], [0], [0]>} : vector<4x8x16xbf16>, vector<4x8x16xbf16>, vector<4x8x8xf32> -> vector<4x8x8xf32>
    "tpu.trace_stop"() : () -> ()
    %cst_65 = arith.constant 2.500000e-01 : f32
    %202 = vector.broadcast %cst_65 : f32 to vector<4x8x8xf32>
    %203 = arith.mulf %201, %202 : vector<4x8x8xf32>
    %204 = vector.broadcast %28 : vector<4x1x8xf32> to vector<4x8x8xf32>
    %205 = arith.addf %203, %204 : vector<4x8x8xf32>
    %cst_66 = arith.constant dense<0xFF800000> : vector<4x8xf32>
    %206 = vector.multi_reduction <maximumf>, %205, %cst_66 [2] : vector<4x8x8xf32> to vector<4x8xf32>
    %207 = vector.shape_cast %206 : vector<4x8xf32> to vector<4x8x1xf32>
    %208 = vector.broadcast %207 : vector<4x8x1xf32> to vector<4x8x8xf32>
    %209 = arith.subf %205, %208 : vector<4x8x8xf32>
    %210 = math.exp %209 : vector<4x8x8xf32>
    %cst_67 = arith.constant dense<0.000000e+00> : vector<4x8xf32>
    %211 = vector.multi_reduction <add>, %210, %cst_67 [2] : vector<4x8x8xf32> to vector<4x8xf32>
    %212 = vector.shape_cast %211 : vector<4x8xf32> to vector<4x8x1xf32>
    %213 = tpu.reciprocal %212 {approx = true} : vector<4x8x1xf32> -> vector<4x8x1xf32>
    %214 = vector.broadcast %213 : vector<4x8x1xf32> to vector<4x8x8xf32>
    %215 = arith.mulf %210, %214 : vector<4x8x8xf32>
    %216 = arith.truncf %215 : vector<4x8x8xf32> to vector<4x8x8xbf16>
    "tpu.trace_start"() <{level = 10 : i32, message = "bqk,bkd->bqd"}> : () -> ()
    %cst_68 = arith.constant dense<0.000000e+00> : vector<4x8x16xf32>
    %217 = tpu.matmul %216, %200, %cst_68 {dimension_numbers = #tpu.dot_dimension_numbers<[2], [1], [1], [2], [0, 0, 0, 1, 1, 2], [0], [0]>} : vector<4x8x8xbf16>, vector<4x8x16xbf16>, vector<4x8x16xf32> -> vector<4x8x16xf32>
    "tpu.trace_stop"() : () -> ()
    %218 = vector.extract_strided_slice %217 {offsets = [0, 0, 0], sizes = [2, 8, 16], strides = [1, 1, 1]} : vector<4x8x16xf32> to vector<2x8x16xf32>
    %219 = vector.extract_strided_slice %217 {offsets = [2, 0, 0], sizes = [2, 8, 16], strides = [1, 1, 1]} : vector<4x8x16xf32> to vector<2x8x16xf32>
    %220 = tpu.concatenate %218, %219 in 2 : vector<2x8x16xf32>, vector<2x8x16xf32> -> vector<2x8x32xf32>
    %221 = vector.shape_cast %220 : vector<2x8x32xf32> to vector<16x32xf32>
    %222 = arith.truncf %221 : vector<16x32xf32> to vector<16x32xbf16>
    %cst_69 = arith.constant dense<0.000000e+00> : vector<16x32xf32>
    %223 = tpu.matmul %222, %164, %cst_69 {dimension_numbers = #tpu.dot_dimension_numbers<[1], [0], [0], [1], [0, 0, 1, 1], [], []>} : vector<16x32xbf16>, vector<32x32xbf16>, vector<16x32xf32> -> vector<16x32xf32>
    %224 = vector.broadcast %172 : vector<1x32xf32> to vector<16x32xf32>
    %225 = arith.addf %223, %224 : vector<16x32xf32>
    %226 = arith.addf %160, %225 : vector<16x32xf32>
    %cst_70 = arith.constant dense<0.000000e+00> : vector<16xf32>
    %227 = vector.multi_reduction <add>, %226, %cst_70 [1] : vector<16x32xf32> to vector<16xf32>
    %228 = vector.shape_cast %227 : vector<16xf32> to vector<16x1xf32>
    %cst_71 = arith.constant 3.200000e+01 : f32
    %229 = vector.broadcast %cst_71 : f32 to vector<16x1xf32>
    %230 = arith.divf %228, %229 : vector<16x1xf32>
    %231 = vector.broadcast %230 : vector<16x1xf32> to vector<16x32xf32>
    %232 = arith.subf %226, %231 : vector<16x32xf32>
    %233 = arith.mulf %232, %232 : vector<16x32xf32>
    %cst_72 = arith.constant dense<0.000000e+00> : vector<16xf32>
    %234 = vector.multi_reduction <add>, %233, %cst_72 [1] : vector<16x32xf32> to vector<16xf32>
    %235 = vector.shape_cast %234 : vector<16xf32> to vector<16x1xf32>
    %cst_73 = arith.constant 3.200000e+01 : f32
    %236 = vector.broadcast %cst_73 : f32 to vector<16x1xf32>
    %237 = arith.divf %235, %236 : vector<16x1xf32>
    %238 = vector.broadcast %230 : vector<16x1xf32> to vector<16x32xf32>
    %239 = arith.subf %226, %238 : vector<16x32xf32>
    %cst_74 = arith.constant 9.99999996E-13 : f32
    %240 = vector.broadcast %cst_74 : f32 to vector<16x1xf32>
    %241 = arith.addf %237, %240 : vector<16x1xf32>
    %242 = math.rsqrt %241 : vector<16x1xf32>
    %243 = vector.broadcast %242 : vector<16x1xf32> to vector<16x32xf32>
    %244 = arith.mulf %239, %243 : vector<16x32xf32>
    %245 = vector.broadcast %173 : vector<1x32xf32> to vector<16x32xf32>
    %246 = arith.mulf %244, %245 : vector<16x32xf32>
    %247 = vector.broadcast %174 : vector<1x32xf32> to vector<16x32xf32>
    %248 = arith.addf %246, %247 : vector<16x32xf32>
    %249 = arith.truncf %248 : vector<16x32xf32> to vector<16x32xbf16>
    %cst_75 = arith.constant dense<0.000000e+00> : vector<16x64xf32>
    %250 = tpu.matmul %249, %166, %cst_75 {dimension_numbers = #tpu.dot_dimension_numbers<[1], [0], [0], [1], [0, 0, 1, 1], [], []>} : vector<16x32xbf16>, vector<32x64xbf16>, vector<16x64xf32> -> vector<16x64xf32>
    %251 = vector.broadcast %175 : vector<1x64xf32> to vector<16x64xf32>
    %252 = arith.addf %250, %251 : vector<16x64xf32>
    %cst_76 = arith.constant 5.000000e-01 : f32
    %253 = vector.broadcast %cst_76 : f32 to vector<16x64xf32>
    %254 = arith.mulf %253, %252 : vector<16x64xf32>
    %cst_77 = arith.constant 4.471500e-02 : f32
    %255 = vector.broadcast %cst_77 : f32 to vector<16x64xf32>
    %256 = arith.mulf %255, %252 : vector<16x64xf32>
    %257 = arith.mulf %256, %252 : vector<16x64xf32>
    %258 = arith.mulf %257, %252 : vector<16x64xf32>
    %259 = arith.addf %252, %258 : vector<16x64xf32>
    %cst_78 = arith.constant 0.797884583 : f32
    %260 = vector.broadcast %cst_78 : f32 to vector<16x64xf32>
    %261 = arith.mulf %260, %259 : vector<16x64xf32>
    %262 = math.tanh %261 : vector<16x64xf32>
    %cst_79 = arith.constant 1.000000e+00 : f32
    %263 = vector.broadcast %cst_79 : f32 to vector<16x64xf32>
    %264 = arith.addf %263, %262 : vector<16x64xf32>
    %265 = arith.mulf %254, %264 : vector<16x64xf32>
    %266 = arith.truncf %265 : vector<16x64xf32> to vector<16x64xbf16>
    %cst_80 = arith.constant dense<0.000000e+00> : vector<16x32xf32>
    %267 = tpu.matmul %266, %168, %cst_80 {dimension_numbers = #tpu.dot_dimension_numbers<[1], [0], [0], [1], [0, 0, 1, 1], [], []>} : vector<16x64xbf16>, vector<64x32xbf16>, vector<16x32xf32> -> vector<16x32xf32>
    %268 = arith.addf %248, %267 : vector<16x32xf32>
    %269 = vector.broadcast %176 : vector<1x32xf32> to vector<16x32xf32>
    %270 = arith.addf %268, %269 : vector<16x32xf32>
    %cst_81 = arith.constant dense<0.000000e+00> : vector<16xf32>
    %271 = vector.multi_reduction <add>, %270, %cst_81 [1] : vector<16x32xf32> to vector<16xf32>
    %272 = vector.shape_cast %271 : vector<16xf32> to vector<16x1xf32>
    %cst_82 = arith.constant 3.200000e+01 : f32
    %273 = vector.broadcast %cst_82 : f32 to vector<16x1xf32>
    %274 = arith.divf %272, %273 : vector<16x1xf32>
    %275 = vector.broadcast %274 : vector<16x1xf32> to vector<16x32xf32>
    %276 = arith.subf %270, %275 : vector<16x32xf32>
    %277 = arith.mulf %276, %276 : vector<16x32xf32>
    %cst_83 = arith.constant dense<0.000000e+00> : vector<16xf32>
    %278 = vector.multi_reduction <add>, %277, %cst_83 [1] : vector<16x32xf32> to vector<16xf32>
    %279 = vector.shape_cast %278 : vector<16xf32> to vector<16x1xf32>
    %cst_84 = arith.constant 3.200000e+01 : f32
    %280 = vector.broadcast %cst_84 : f32 to vector<16x1xf32>
    %281 = arith.divf %279, %280 : vector<16x1xf32>
    %282 = vector.broadcast %274 : vector<16x1xf32> to vector<16x32xf32>
    %283 = arith.subf %270, %282 : vector<16x32xf32>
    %cst_85 = arith.constant 9.99999996E-13 : f32
    %284 = vector.broadcast %cst_85 : f32 to vector<16x1xf32>
    %285 = arith.addf %281, %284 : vector<16x1xf32>
    %286 = math.rsqrt %285 : vector<16x1xf32>
    %287 = vector.broadcast %286 : vector<16x1xf32> to vector<16x32xf32>
    %288 = arith.mulf %283, %287 : vector<16x32xf32>
    %289 = vector.broadcast %177 : vector<1x32xf32> to vector<16x32xf32>
    %290 = arith.mulf %288, %289 : vector<16x32xf32>
    %291 = vector.broadcast %178 : vector<1x32xf32> to vector<16x32xf32>
    %292 = arith.addf %290, %291 : vector<16x32xf32>
    %293 = vector.shape_cast %292 : vector<16x32xf32> to vector<2x8x32xf32>
    %294 = vector.extract_strided_slice %293 {offsets = [0, 0, 0], sizes = [2, 1, 32], strides = [1, 1, 1]} : vector<2x8x32xf32> to vector<2x1x32xf32>
    %295 = vector.shape_cast %294 : vector<2x1x32xf32> to vector<2x32xf32>
    %c0_86 = arith.constant 0 : index
    %c0_87 = arith.constant 0 : index
    %c0_88 = arith.constant 0 : index
    %296 = vector.load %arg3[%c0_86, %c0_87, %c0_88] : memref<2x1x32xf32, #tpu.memory_space<vmem>>, vector<2x1x32xf32>
    %297 = vector.shape_cast %296 : vector<2x1x32xf32> to vector<2x32xf32>
    %298 = arith.addf %295, %297 : vector<2x32xf32>
    %c0_89 = arith.constant 0 : index
    %c0_90 = arith.constant 0 : index
    %299 = vector.load %arg10[%c0_89, %c0_90] : memref<32x128xbf16, #tpu.memory_space<vmem>>, vector<32x128xbf16>
    %300 = arith.truncf %298 : vector<2x32xf32> to vector<2x32xbf16>
    %cst_91 = arith.constant dense<0.000000e+00> : vector<2x128xf32>
    %301 = tpu.matmul %300, %299, %cst_91 {dimension_numbers = #tpu.dot_dimension_numbers<[1], [0], [0], [1], [0, 0, 1, 1], [], []>} : vector<2x32xbf16>, vector<32x128xbf16>, vector<2x128xf32> -> vector<2x128xf32>
    %c0_92 = arith.constant 0 : index
    %c0_93 = arith.constant 0 : index
    %302 = vector.load %arg11[%c0_92, %c0_93] : memref<1x128xf32, #tpu.memory_space<vmem>>, vector<1x128xf32>
    %303 = vector.broadcast %302 : vector<1x128xf32> to vector<2x128xf32>
    %304 = arith.addf %301, %303 : vector<2x128xf32>
    %305 = vector.shape_cast %304 : vector<2x128xf32> to vector<2x1x128xf32>
    %c0_94 = arith.constant 0 : index
    %c0_95 = arith.constant 0 : index
    %c0_96 = arith.constant 0 : index
    %306 = vector.load %arg12[%c0_94, %c0_95, %c0_96] : memref<2x1x128xf32, #tpu.memory_space<vmem>>, vector<2x1x128xf32>
    tpu.vector_store %arg12[%c0_94, %c0_95, %c0_96], %305 {strides = array<i32>} : memref<2x1x128xf32, #tpu.memory_space<vmem>>, vector<2x1x128xf32>,
    return
  }
  func.func @transform_0(%arg0: i32) -> (i32, i32, i32) {
    %c0_i32 = arith.constant 0 : i32
    %c0_i32_0 = arith.constant 0 : i32
    %c0_i32_1 = arith.constant 0 : i32
    return %arg0, %c0_i32, %c0_i32_0 : i32, i32, i32
  }
  func.func @transform_1(%arg0: i32) -> (i32, i32, i32) {
    %c0_i32 = arith.constant 0 : i32
    %c0_i32_0 = arith.constant 0 : i32
    %c0_i32_1 = arith.constant 0 : i32
    return %arg0, %c0_i32, %c0_i32_0 : i32, i32, i32
  }
  func.func @transform_2(%arg0: i32) -> (i32, i32, i32) {
    %c0_i32 = arith.constant 0 : i32
    %c0_i32_0 = arith.constant 0 : i32
    %c0_i32_1 = arith.constant 0 : i32
    return %arg0, %c0_i32, %c0_i32_0 : i32, i32, i32
  }
  func.func @transform_3(%arg0: i32) -> (i32, i32) {
    %c0_i32 = arith.constant 0 : i32
    %c0_i32_0 = arith.constant 0 : i32
    %c0_i32_1 = arith.constant 0 : i32
    return %c0_i32, %c0_i32_0 : i32, i32
  }
  func.func @transform_4(%arg0: i32) -> (i32, i32, i32) {
    %c0_i32 = arith.constant 0 : i32
    %c0_i32_0 = arith.constant 0 : i32
    %c0_i32_1 = arith.constant 0 : i32
    %c0_i32_2 = arith.constant 0 : i32
    return %c0_i32, %c0_i32_0, %c0_i32_1 : i32, i32, i32
  }
  func.func @transform_5(%arg0: i32) -> (i32, i32, i32) {
    %c0_i32 = arith.constant 0 : i32
    %c0_i32_0 = arith.constant 0 : i32
    %c0_i32_1 = arith.constant 0 : i32
    %c0_i32_2 = arith.constant 0 : i32
    return %c0_i32, %c0_i32_0, %c0_i32_1 : i32, i32, i32
  }
  func.func @transform_6(%arg0: i32) -> (i32, i32, i32) {
    %c0_i32 = arith.constant 0 : i32
    %c0_i32_0 = arith.constant 0 : i32
    %c0_i32_1 = arith.constant 0 : i32
    %c0_i32_2 = arith.constant 0 : i32
    return %c0_i32, %c0_i32_0, %c0_i32_1 : i32, i32, i32
  }
  func.func @transform_7(%arg0: i32) -> (i32, i32, i32) {
    %c0_i32 = arith.constant 0 : i32
    %c0_i32_0 = arith.constant 0 : i32
    %c0_i32_1 = arith.constant 0 : i32
    %c0_i32_2 = arith.constant 0 : i32
    return %c0_i32, %c0_i32_0, %c0_i32_1 : i32, i32, i32
  }
  func.func @transform_8(%arg0: i32) -> (i32, i32, i32) {
    %c0_i32 = arith.constant 0 : i32
    %c0_i32_0 = arith.constant 0 : i32
    %c0_i32_1 = arith.constant 0 : i32
    %c0_i32_2 = arith.constant 0 : i32
    return %c0_i32, %c0_i32_0, %c0_i32_1 : i32, i32, i32
  }
  func.func @transform_9(%arg0: i32) -> (i32, i32) {
    %c0_i32 = arith.constant 0 : i32
    %c0_i32_0 = arith.constant 0 : i32
    %c0_i32_1 = arith.constant 0 : i32
    return %c0_i32, %c0_i32_0 : i32, i32
  }
  func.func @transform_10(%arg0: i32) -> (i32, i32) {
    %c0_i32 = arith.constant 0 : i32
    %c0_i32_0 = arith.constant 0 : i32
    %c0_i32_1 = arith.constant 0 : i32
    return %c0_i32, %c0_i32_0 : i32, i32
  }
  func.func @transform_11(%arg0: i32) -> (i32, i32, i32) {
    %c0_i32 = arith.constant 0 : i32
    %c0_i32_0 = arith.constant 0 : i32
    %c0_i32_1 = arith.constant 0 : i32
    return %arg0, %c0_i32, %c0_i32_0 : i32, i32, i32
  }
}

</mosaic_0001>

<bundles_post_ra>
// kernel: tpu_custom_call.1
= control target key start
LH: loop header
LB: loop body
LE: loop exit
PB: predicated region body
PF: predicated region fallthrough
CT: control target
= control target key end

     0   :  { %6 = vsyncpa [#allocation3], 0  ;;  %s102_s0 = inlined_call_operand.hbm [shape: f32[8,128], index: 0, kind: input, shape index: {}]   ;;  %s103_s1 = inlined_call_operand.hbm [shape: f32[8,128], index: 1, kind: output, shape index: {}]  }
   0x1   :  { %7 = vsyncpa [#allocation4], 0  ;;  %s84_s6 = smov [#allocation2]  }
   0x2   :  { %s14_s7 = sshll.u32 %s84_s6, 4  ;;  %s15_s7 = int_to_ptr.vmem [resolvable:$true] %s14_s7 }
   0x3   :  { %s48_s8 = scalar_lea.vmem %s15_s7, 128  ;;  %p53_p1 = scmp.lt.s32.totalorder %s15_s7, %s15_s7 }
   0x4   :  { %p49_p0 = scmp.ne.s32.totalorder %s15_s7, %s48_s8  ;;  %p54_p2 = scmp.lt.s32.totalorder %s48_s8, %s48_s8 }
   0x6   :  { %p55_p3 = por %p54_p2, %p53_p1 }
   0x8   :  { %p56_p4 = pnand %p55_p3, %p49_p0 }
   0xa   :  { %59 = shalt.err (!%p56_p4)
}
   0xb   :  { %17 = dma.hbm_to_vmem [thread:$0]  %s102_s0, 128, %s15_s7, [#allocation3]  }
   0xc   :  { %80 = dma.done.wait [#allocation3], 128  }
   0xd   :  { %81 = vsyncadd [#allocation3], 4294967168  ;;  %s85_s11 = smov [#allocation5]   ;;  %v21_v0 = vld [vmem:[#allocation2] sm:$0xff] }
   0xe   :  { %s29_s12 = sshll.u32 %s85_s11, 4  ;;  %22 = vst [vmem:[#allocation5] sm:$0xff] %v21_v0  ;;  %s30_s12 = int_to_ptr.vmem [resolvable:$true] %s29_s12 }
   0xf   :  { %s60_s13 = scalar_lea.vmem %s30_s12, 128  ;;  %p65_p6 = scmp.lt.s32.totalorder %s30_s12, %s30_s12 }
  0x10   :  { %p61_p5 = scmp.ne.s32.totalorder %s30_s12, %s60_s13  ;;  %p66_p7 = scmp.lt.s32.totalorder %s60_s13, %s60_s13 }
  0x12   :  { %p67_p8 = por %p66_p7, %p65_p6 }
  0x14   :  { %p68_p9 = pnand %p67_p8, %p61_p5 }
  0x16   :  { %71 = shalt.err (!%p68_p9)
}
  0x17   :  { %32 = dma.vmem_to_hbm [thread:$0]  %s30_s12, 128, %s103_s1, [#allocation4]  }
  0x18   :  { %82 = dma.done.wait [#allocation4], 128  }
  0x19   :  { %83 = vsyncadd [#allocation4], 4294967168 }
  0x1a   :  { %36 = vsyncpa [#allocation3], 1 }
  0x1b   :  { %37 = vsyncpa [#allocation4], 1 }

// kernel: behrt_forward.1
= control target key start
LH: loop header
LB: loop body
LE: loop exit
PB: predicated region body
PF: predicated region fallthrough
CT: control target
= control target key end

     0   :  { %vm42_vm0 = vcmask 261120   ;;  %v2323_v14 = vmov 0.0   ;;  %vm2324_vm1 = vmmov 0   ;;  %v70_v23 = vlaneseq  ;;  %s2325_s27 = smov 96   ;;  %s2326_s28 = smov 112   ;;  %s2809_s0 = inlined_call_operand.vmem [shape: f32[2,8,32], index: 0, kind: input, shape index: {}]   ;;  %s2810_s4 = inlined_call_operand.vmem [shape: bf16[2,32,96], index: 4, kind: input, shape index: {}]   ;;  %s2811_s3 = inlined_call_operand.vmem [shape: f32[2,32], index: 3, kind: input, shape index: {}]   ;;  %s2812_s8 = inlined_call_operand.vmem [shape: f32[2,8,128], index: 8, kind: input, shape index: {}]   ;;  %s2813_s1 = inlined_call_operand.vmem [shape: f32[2,1,8], index: 1, kind: input, shape index: {}]   ;;  %s2814_s5 = inlined_call_operand.vmem [shape: bf16[2,32,32], index: 5, kind: input, shape index: {}]   ;;  %s2815_s6 = inlined_call_operand.vmem [shape: bf16[2,32,64], index: 6, kind: input, shape index: {}]   ;;  %s2816_s7 = inlined_call_operand.vmem [shape: bf16[2,64,32], index: 7, kind: input, shape index: {}]   ;;  %s2817_s9 = inlined_call_operand.vmem [shape: bf16[32,128], index: 9, kind: input, shape index: {}]   ;;  %s2818_s2 = inlined_call_operand.vmem [shape: f32[2,1,32], index: 2, kind: input, shape index: {}]   ;;  %s2819_s10 = inlined_call_operand.vmem [shape: f32[1,128], index: 10, kind: input, shape index: {}]   ;;  %s2820_s11 = inlined_call_operand.vmem [shape: f32[2,1,128], index: 11, kind: output, shape index: {}]  }
   0x1   :  { %v40_v0 = vld [vmem:[%s2809_s0] sm:$0xff]  ;;  %v41_v1 = vld [vmem:[%s2809_s0 + $0x8] sm:$0xff]  ;;  %2038 = vmatprep.subr.bf16.mxu0 %v2323_v14  ;;  %2042 = vmatprep.mubr.msk.bf16.mxu0 %vm2324_vm1, %v2323_v14  ;;  %vm181_vm2 = vcmask 130048   ;;  %vm395_vm3 = vcmask 64512   ;;  %s2327_s14 = smov 64   ;;  %vm449_vm4 = vcmask 1043456  }
   0x2   :  { %v43_v2 = vsel %vm42_vm0, %v40_v0, 0.0  ;;  %v46_v3 = vsel %vm42_vm0, %v41_v1, 0.0  ;;  %v2241_v15 = vld [vmem:[%s2810_s4 + $0x8] sm:$0xff]   ;;  %2046 = vmatprep.subr.bf16.mxu1 %v2323_v14  ;;  %2048 = vmatprep.mubr.msk.bf16.mxu1 %vm2324_vm1, %v2323_v14  ;;  %v2242_v16 = vld [vmem:[%s2810_s4] sm:$0xff]   ;;  %v2414_v24 = vshrl.u32 %v70_v23, 7  ;;  %s2328_s18 = smov 16  }
   0x3   :  { %44 = vadd.xlane.f32.xlu0 %v43_v2  ;;  %2039 = vmatpush3.bf16.msra.mxu0 %v2241_v15  ;;  %v39_v26 = vld [vmem:[%s2811_s3] sm:$0x3]  ;;  %vm852_vm5 = vcmask 523264   ;;  %vm1813_vm6 = vcmask 1041409  }
   0x4   :  { %2040 = vmatprep.subr.bf16.mxu0 %v2323_v14  ;;  %v2417_v25 = vsub.s32 0, %v2414_v24  ;;  %v2424_v30 = vsub.s32 1, %v2414_v24  ;;  %v2439_v39 = vld [vmem:[%s2812_s8] sm:$0xff] }
   0x6   :  { %v73_v29 = vrot.slane %v39_v26, %v2417_v25  ;;  %v79_v34 = vrot.slane %v39_v26, %v2424_v30  ;;  %v109_v40 = vrot.slane %v2439_v39, %v2417_v25 }
   0x7   :  { %47 = vadd.xlane.f32.xlu0 %v46_v3  ;;  %2041 = vmatpush3.bf16.msra.mxu0 %v2242_v16 }
   0x8   :  { %2052 = vmatprep.subr.bf16.mxu0 %v2323_v14 }
  0x8c   :  { %v45_v4 = vpop.xlane.xlu0 %44 }
  0x8d   :  { %v50_v5 = vmul.f32 0.03125, %v45_v4 }
  0x8f   :  { %v52_v6 = vsub.f32 %v40_v0, %v50_v5  ;;  %v2487_v0 = vld [vmem:[%s2813_s1] ss:$0 sm:$0xff] }
  0x90   :  { %v48_v7 = vpop.xlane.xlu0 %47 }
  0x91   :  { %v51_v8 = vmul.f32 0.03125, %v48_v7  ;;  %v54_v9 = vmul.f32 %v52_v6, %v52_v6 }
  0x93   :  { %v53_v10 = vsub.f32 %v41_v1, %v51_v8  ;;  %v56_v11 = vsel %vm42_vm0, %v54_v9, 0.0 }
  0x94   :  { %57 = vadd.xlane.f32.xlu1 %v56_v11 }
  0x95   :  { %v55_v12 = vmul.f32 %v53_v10, %v53_v10 }
  0x97   :  { %v59_v13 = vsel %vm42_vm0, %v55_v12, 0.0 }
  0x98   :  { %60 = vadd.xlane.f32.xlu1 %v59_v13 }
 0x11d   :  { %v58_v17 = vpop.xlane.xlu1 %57 }
 0x11e   :  { %v62_v18 = vmul.f32 0.03125, %v58_v17 }
 0x120   :  { %v64_v19 = vadd.f32 1e-12, %v62_v18 }
 0x121   :  { %v61_v20 = vpop.xlane.xlu1 %60 }
 0x122   :  { %2263 = vrsqrt.f32 %v64_v19  ;;  %v63_v21 = vmul.f32 0.03125, %v61_v20 }
 0x124   :  { %v65_v22 = vadd.f32 1e-12, %v63_v21 }
 0x126   :  { %2265 = vrsqrt.f32 %v65_v22 }
 0x12f   :  { %v2264_v27 = vpop.eup %2263 }
 0x130   :  { %v68_v28 = vmul.f32 %v2264_v27, %v52_v6  ;;  %v2493_v6 = vld [vmem:[%s2813_s1 + $0x1] ss:$0 sm:$0xff] }
 0x132   :  { %v74_v33 = vmul.f32 %v73_v29, %v68_v28 }
 0x133   :  { %v2266_v31 = vpop.eup %2265 }
 0x134   :  { %v69_v32 = vmul.f32 %v2266_v31, %v53_v10  ;;  %v2427_v36 = vadd.f32 %v79_v34, %v74_v33 }
 0x136   :  { %v75_v35 = vmul.f32 %v73_v29, %v69_v32 }
 0x138   :  { %v2429_v37 = vadd.f32 %v79_v34, %v75_v35 }
 0x13a   :  { %v105_v38 = vpack.c.bf16 %v2429_v37, %v2427_v36 }
 0x13c   :  { %2043 = vmatmul.mubr.msk.bf16.vlgmr.msra.gmra.mxu0 %vm42_vm0, %v105_v38 }
 0x13d   :  { %2054 = vmatprep.mubr.msk.bf16.mxu0 %vm2324_vm1, %v2323_v14 }
 0x1fc   :  { %v159_v41 = vpop.f32.mrf.mxu0 }
 0x1fd   :  { %v160_v42 = vadd.f32 %v159_v41, %v109_v40 }
 0x1fe   :  { %v2044_v43 = vpop.f32.mrf.mxu0 }
 0x1ff   :  { %v2443_v44 = vpack.c.bf16 %v160_v42, %v160_v42 }
 0x200   :  { %v162_v45 = vpop.f32.mrf.mxu0 }
 0x201   :  { %v163_v46 = vadd.f32 %v162_v45, %v109_v40  ;;  %179 = vrot.lane.b32.xlu1 %v2443_v44, %s2325_s27 }
 0x202   :  { %v2045_v47 = vpop.f32.mrf.mxu0 }
 0x203   :  { %v2221_v48 = vpack.i.bf16 %v163_v46, %v160_v42  ;;  %v2447_v49 = vpack.c.bf16 %v163_v46, %v163_v46 }
 0x205   :  { %2222 = vrot.lane.b32.xlu0 %v2221_v48, %s2326_s28  ;;  %229 = vrot.lane.b32.xlu1 %v2447_v49, %s2325_s27 }
 0x273   :  { %v180_v50 = vpop.permute.xlu1 %179 }
 0x274   :  { %v186_v51 = vsel %vm181_vm2, %v180_v50, 0 }
 0x275   :  { %2047 = vmatpush3.bf16.xpose.msra.mxu1 %v186_v51 }
 0x276   :  { %2058 = vmatprep.subr.bf16.mxu1 %v2323_v14 }
 0x277   :  { %v2223_v52 = vpop.permute.xlu0 %2222  ;;  %v230_v53 = vpop.permute.xlu1 %229 }
 0x278   :  { %v2225_v54 = vunpack.i.h.bf16 %v2223_v52  ;;  %v2224_v55 = vunpack.i.l.bf16 %v2223_v52  ;;  %v235_v56 = vsel %vm181_vm2, %v230_v53, 0 }
 0x279   :  { %2053 = vmatpush3.bf16.xpose.msra.mxu0 %v235_v56 }
 0x27a   :  { %v2455_v57 = vpack.c.bf16 %v2225_v54, %v2225_v54  ;;  %v2457_v58 = vpack.c.bf16 %v2224_v55, %v2224_v55  ;;  %2064 = vmatprep.subr.bf16.mxu0 %v2323_v14 }
 0x27c   :  { %2049 = vmatmul.mubr.msk.bf16.vlgmr.msra.gmra.mxu1 %vm181_vm2, %v2443_v44  ;;  %327 = vrot.lane.b32.xlu0 %v2455_v57, %s2325_s27 }
 0x27d   :  { %278 = vrot.lane.b32.xlu1 %v2457_v58, %s2325_s27  ;;  %2060 = vmatprep.mubr.msk.bf16.mxu1 %vm2324_vm1, %v2323_v14 }
 0x280   :  { %2055 = vmatmul.mubr.msk.bf16.vlgmr.msra.gmra.mxu0 %vm181_vm2, %v2447_v49 }
 0x281   :  { %2066 = vmatprep.mubr.msk.bf16.mxu0 %vm2324_vm1, %v2323_v14 }
 0x2ee   :  { %v328_v59 = vpop.permute.xlu0 %327 }
 0x2ef   :  { %v333_v60 = vsel %vm181_vm2, %v328_v59, 0  ;;  %v279_v61 = vpop.permute.xlu1 %278 }
 0x2f0   :  { %v284_v62 = vsel %vm181_vm2, %v279_v61, 0  ;;  %2065 = vmatpush3.bf16.xpose.msra.mxu0 %v333_v60 }
 0x2f1   :  { %2059 = vmatpush3.bf16.xpose.msra.mxu1 %v284_v62  ;;  %2076 = vmatprep.subr.bf16.mxu0 %v2323_v14 }
 0x2f2   :  { %2070 = vmatprep.subr.bf16.mxu1 %v2323_v14 }
 0x2f7   :  { %2067 = vmatmul.mubr.msk.bf16.vlgmr.msra.gmra.mxu0 %vm181_vm2, %v2455_v57 }
 0x2f8   :  { %2061 = vmatmul.mubr.msk.bf16.vlgmr.msra.gmra.mxu1 %vm181_vm2, %v2457_v58  ;;  %2078 = vmatprep.mubr.msk.bf16.mxu0 %vm2324_vm1, %v2323_v14 }
 0x2f9   :  { %2072 = vmatprep.mubr.msk.bf16.mxu1 %vm2324_vm1, %v2323_v14 }
 0x33c   :  { %v222_v63 = vpop.f32.mrf.mxu1 }
 0x33d   :  { %v375_v1 = vmul.f32 0.25, %v222_v63 }
 0x33e   :  { %v2050_v2 = vpop.f32.mrf.mxu1 }
 0x33f   :  { %v391_v3 = vadd.f32 %v2487_v0, %v375_v1 }
 0x340   :  { %v225_v4 = vpop.f32.mrf.mxu1  ;;  %v271_v5 = vpop.f32.mrf.mxu0 }
 0x341   :  { %v376_v7 = vmul.f32 0.25, %v271_v5  ;;  %v396_v8 = vsel %vm395_vm3, %v391_v3, -inf }
 0x342   :  { %v2051_v9 = vpop.f32.mrf.mxu1  ;;  %397 = vmax.xlane.f32.xlu1 %v396_v8  ;;  %v2056_v10 = vpop.f32.mrf.mxu0 }
 0x343   :  { %v392_v11 = vadd.f32 %v2493_v6, %v376_v7 }
 0x344   :  { %v274_v12 = vpop.f32.mrf.mxu0 }
 0x345   :  { %v399_v13 = vsel %vm395_vm3, %v392_v11, -inf }
 0x346   :  { %400 = vmax.xlane.f32.xlu0 %v399_v13  ;;  %v2057_v15 = vpop.f32.mrf.mxu0 }
 0x353   :  { %444 = vrot.lane.b32.xlu1 %v2443_v44, %s2327_s14 }
 0x3b7   :  { %v369_v16 = vpop.f32.mrf.mxu0 }
 0x3b8   :  { %v320_v17 = vpop.f32.mrf.mxu1  ;;  %v378_v19 = vmul.f32 0.25, %v369_v16 }
 0x3b9   :  { %v377_v18 = vmul.f32 0.25, %v320_v17  ;;  %v2068_v20 = vpop.f32.mrf.mxu0 }
 0x3ba   :  { %v2062_v21 = vpop.f32.mrf.mxu1  ;;  %v394_v29 = vadd.f32 %v2493_v6, %v378_v19 }
 0x3bb   :  { %v372_v22 = vpop.f32.mrf.mxu0  ;;  %v393_v23 = vadd.f32 %v2487_v0, %v377_v18 }
 0x3bc   :  { %v323_v26 = vpop.f32.mrf.mxu1  ;;  %v405_v32 = vsel %vm395_vm3, %v394_v29, -inf }
 0x3bd   :  { %v402_v27 = vsel %vm395_vm3, %v393_v23, -inf  ;;  %v2069_v28 = vpop.f32.mrf.mxu0 }
 0x3be   :  { %v2063_v31 = vpop.f32.mrf.mxu1  ;;  %403 = vmax.xlane.f32.xlu0 %v402_v27  ;;  %v2244_v27 = vld [vmem:[%s2814_s5] sm:$0xff]  }
 0x3c2   :  { %406 = vmax.xlane.f32.xlu0 %v405_v32 }
 0x3cb   :  { %v398_v33 = vpop.xlane.xlu1 %397 }
 0x3cc   :  { %v408_v34 = vsub.f32 %v391_v3, %v398_v33 }
 0x3ce   :  { %v412_v35 = vmul.f32 1.442695, %v408_v34 }
 0x3cf   :  { %v445_v38 = vpop.permute.xlu1 %444  ;;  %v401_v40 = vpop.xlane.xlu0 %400 }
 0x3d0   :  { %2267 = vpow2.f32 %v412_v35  ;;  %v451_v41 = vsel %vm449_vm4, %v445_v38, 0  ;;  %v409_v42 = vsub.f32 %v392_v11, %v401_v40 }
 0x3d1   :  { %2071 = vmatpush3.bf16.msra.mxu1 %v451_v41 }
 0x3d2   :  { %v414_v43 = vmul.f32 1.442695, %v409_v42  ;;  %2082 = vmatprep.subr.bf16.mxu1 %v2323_v14 }
 0x3d4   :  { %2269 = vpow2.f32 %v414_v43 }
 0x3dd   :  { %v2268_v44 = vpop.eup %2267 }
 0x3de   :  { %v420_v45 = vsel %vm395_vm3, %v2268_v44, 0.0 }
 0x3df   :  { %421 = vadd.xlane.f32.xlu1 %v420_v45 }
 0x3e1   :  { %v2270_v46 = vpop.eup %2269 }
 0x3e2   :  { %v423_v47 = vsel %vm395_vm3, %v2270_v46, 0.0 }
 0x3e3   :  { %424 = vadd.xlane.f32.xlu0 %v423_v47 }
 0x447   :  { %v404_v48 = vpop.xlane.xlu0 %403 }
 0x448   :  { %v410_v50 = vsub.f32 %v393_v23, %v404_v48  ;;  %v2243_v23 = vld [vmem:[%s2814_s5 + $0x8] sm:$0xff]  }
 0x44a   :  { %v416_v51 = vmul.f32 1.442695, %v410_v50 }
 0x44b   :  { %v407_v52 = vpop.xlane.xlu0 %406 }
 0x44c   :  { %2271 = vpow2.f32 %v416_v51  ;;  %v411_v53 = vsub.f32 %v394_v29, %v407_v52  ;;  %v651_v51 = vrot.slane %v2439_v39, %v2424_v30 }
 0x44e   :  { %v418_v54 = vmul.f32 1.442695, %v411_v53 }
 0x450   :  { %2273 = vpow2.f32 %v418_v54 }
 0x459   :  { %v2272_v55 = vpop.eup %2271 }
 0x45a   :  { %v426_v56 = vsel %vm395_vm3, %v2272_v55, 0.0 }
 0x45b   :  { %427 = vadd.xlane.f32.xlu1 %v426_v56 }
 0x45d   :  { %v2274_v59 = vpop.eup %2273 }
 0x45e   :  { %v429_v60 = vsel %vm395_vm3, %v2274_v59, 0.0 }
 0x45f   :  { %430 = vadd.xlane.f32.xlu0 %v429_v60 }
 0x468   :  { %v422_v61 = vpop.xlane.xlu1 %421 }
 0x469   :  { %2275 = vrcp.f32 %v422_v61 }
 0x46c   :  { %541 = vrot.lane.b32.xlu1 %v2457_v58, %s2327_s14  ;;  %v425_v2 = vpop.xlane.xlu0 %424 }
 0x46d   :  { %2277 = vrcp.f32 %v425_v2 }
 0x470   :  { %589 = vrot.lane.b32.xlu1 %v2455_v57, %s2327_s14 }
 0x475   :  { %493 = vrot.lane.b32.xlu0 %v2447_v49, %s2327_s14 }
 0x476   :  { %v2276_v62 = vpop.eup %2275 }
 0x477   :  { %v436_v63 = vmul.f32 %v2276_v62, %v2268_v44 }
 0x479   :  { %v440_v1 = vpack.c.bf16 %v436_v63, %v436_v63 }
 0x47a   :  { %v2278_v4 = vpop.eup %2277 }
 0x47b   :  { %2073 = vmatmul.mubr.msk.bf16.vlgmr.msra.gmra.mxu1 %vm395_vm3, %v440_v1  ;;  %v437_v49 = vmul.f32 %v2278_v4, %v2270_v46 }
 0x47c   :  { %2084 = vmatprep.mubr.msk.bf16.mxu1 %vm2324_vm1, %v2323_v14 }
 0x47d   :  { %v441_v10 = vpack.c.bf16 %v437_v49, %v437_v49 }
 0x4e4   :  { %v428_v3 = vpop.xlane.xlu1 %427 }
 0x4e5   :  { %2279 = vrcp.f32 %v428_v3 }
 0x4e8   :  { %v542_v58 = vpop.permute.xlu1 %541  ;;  %v431_v5 = vpop.xlane.xlu0 %430 }
 0x4e9   :  { %v547_v57 = vsel %vm449_vm4, %v542_v58, 0  ;;  %2281 = vrcp.f32 %v431_v5 }
 0x4ea   :  { %2083 = vmatpush3.bf16.msra.mxu1 %v547_v57 }
 0x4eb   :  { %2094 = vmatprep.subr.bf16.mxu1 %v2323_v14 }
 0x4ec   :  { %v494_v7 = vpop.permute.xlu0 %493  ;;  %v590_v9 = vpop.permute.xlu1 %589 }
 0x4ed   :  { %v499_v8 = vsel %vm449_vm4, %v494_v7, 0  ;;  %v595_v11 = vsel %vm449_vm4, %v590_v9, 0 }
 0x4ee   :  { %2077 = vmatpush3.bf16.msra.mxu0 %v499_v8  ;;  %v2246_v8 = vld [vmem:[%s2815_s6] sm:$0xff]  }
 0x4ef   :  { %2088 = vmatprep.subr.bf16.mxu0 %v2323_v14 }
 0x4f1   :  { %2079 = vmatmul.mubr.msk.bf16.vlgmr.msra.gmra.mxu0 %vm395_vm3, %v441_v10 }
 0x4f2   :  { %v2280_v12 = vpop.eup %2279  ;;  %2089 = vmatpush3.bf16.msra.mxu0 %v595_v11  ;;  %2090 = vmatprep.mubr.msk.bf16.mxu0 %vm2324_vm1, %v2323_v14 }
 0x4f3   :  { %v438_v13 = vmul.f32 %v2280_v12, %v2272_v55  ;;  %2102 = vmatprep.subr.bf16.mxu0 %v2323_v14 }
 0x4f5   :  { %v442_v15 = vpack.c.bf16 %v438_v13, %v438_v13 }
 0x4f6   :  { %v2282_v16 = vpop.eup %2281 }
 0x4f7   :  { %2085 = vmatmul.mubr.msk.bf16.vlgmr.msra.gmra.mxu1 %vm395_vm3, %v442_v15  ;;  %v439_v17 = vmul.f32 %v2282_v16, %v2274_v59  ;;  %v738_v16 = vsub.s32 2, %v2414_v24 }
 0x4f8   :  { %2098 = vmatprep.mubr.msk.bf16.mxu1 %vm2324_vm1, %v2323_v14  ;;  %2095 = vmatpush3.bf16.msra.mxu1 %v2243_v23 }
 0x4f9   :  { %v443_v18 = vpack.c.bf16 %v439_v17, %v439_v17  ;;  %2096 = vmatprep.subr.bf16.mxu1 %v2323_v14 }
 0x4fb   :  { %2091 = vmatmul.mubr.msk.bf16.vlgmr.msra.gmra.mxu0 %vm395_vm3, %v443_v18 }
 0x4fc   :  { %2106 = vmatprep.mubr.msk.bf16.mxu0 %vm2324_vm1, %v2323_v14  ;;  %2097 = vmatpush3.bf16.msra.mxu1 %v2244_v27 }
 0x4fd   :  { %2110 = vmatprep.subr.bf16.mxu1 %v2323_v14 }
 0x53b   :  { %v487_v19 = vpop.f32.mrf.mxu1 }
 0x53d   :  { %v2074_v20 = vpop.f32.mrf.mxu1 }
 0x53e   :  { %v744_v20 = vsub.s32 3, %v2414_v24 }
 0x53f   :  { %v490_v21 = vpop.f32.mrf.mxu1 }
 0x541   :  { %v2075_v22 = vpop.f32.mrf.mxu1 }
 0x5b1   :  { %v535_v26 = vpop.f32.mrf.mxu0 }
 0x5b3   :  { %v2080_v28 = vpop.f32.mrf.mxu0 }
 0x5b5   :  { %v538_v29 = vpop.f32.mrf.mxu0 }
 0x5b7   :  { %v2081_v31 = vpop.f32.mrf.mxu0  ;;  %v583_v32 = vpop.f32.mrf.mxu1 }
 0x5b9   :  { %v2086_v33 = vpop.f32.mrf.mxu1 }
 0x5ba   :  { %v2248_v33 = vld [vmem:[%s2816_s7 + $0x10] sm:$0xff]  }
 0x5bb   :  { %v586_v34 = vpop.f32.mrf.mxu1  ;;  %v631_v35 = vpop.f32.mrf.mxu0 }
 0x5bc   :  { %v2226_v38 = vpack.i.bf16 %v631_v35, %v583_v32  ;;  %v2247_v32 = vld [vmem:[%s2816_s7 + $0x18] sm:$0xff]   ;;  %v2249_v34 = vld [vmem:[%s2816_s7 + $0x8] sm:$0xff]   ;;  %v2250_v35 = vld [vmem:[%s2816_s7] sm:$0xff]  }
 0x5bd   :  { %v2087_v40 = vpop.f32.mrf.mxu1  ;;  %v2092_v41 = vpop.f32.mrf.mxu0 }
 0x5be   :  { %2227 = vrot.lane.b32.xlu1 %v2226_v38, %s2328_s18  ;;  %v751_v38 = vsub.s32 4, %v2414_v24 }
 0x5bf   :  { %v634_v42 = vpop.f32.mrf.mxu0 }
 0x5c0   :  { %v752_v40 = vrot.slane %v2439_v39, %v751_v38 }
 0x5c1   :  { %v2093_v43 = vpop.f32.mrf.mxu0 }
 0x630   :  { %v2228_v44 = vpop.permute.xlu1 %2227 }
 0x631   :  { %v2230_v45 = vunpack.i.h.bf16 %v2228_v44  ;;  %v2229_v46 = vunpack.i.l.bf16 %v2228_v44 }
 0x633   :  { %v646_v47 = vsel %vm181_vm2, %v535_v26, %v2230_v45  ;;  %v645_v48 = vsel %vm181_vm2, %v487_v19, %v2229_v46  ;;  %v739_v19 = vrot.slane %v2439_v39, %v738_v16  ;;  %v745_v26 = vrot.slane %v2439_v39, %v744_v20 }
 0x634   :  { %v647_v50 = vpack.c.bf16 %v646_v47, %v645_v48 }
 0x636   :  { %2099 = vmatmul.mubr.msk.bf16.vlgmr.msra.gmra.mxu1 %vm42_vm0, %v647_v50 }
 0x637   :  { %2118 = vmatprep.mubr.msk.bf16.mxu1 %vm2324_vm1, %v2323_v14  ;;  %2111 = vmatpush3.bf16.msra.mxu1 %v2247_v32 }
 0x638   :  { %2112 = vmatprep.subr.bf16.mxu1 %v2323_v14 }
 0x63b   :  { %2113 = vmatpush3.bf16.msra.mxu1 %v2248_v33 }
 0x63c   :  { %2114 = vmatprep.subr.bf16.mxu1 %v2323_v14 }
 0x63f   :  { %2115 = vmatpush3.bf16.msra.mxu1 %v2249_v34 }
 0x640   :  { %2116 = vmatprep.subr.bf16.mxu1 %v2323_v14 }
 0x643   :  { %2117 = vmatpush3.bf16.msra.mxu1 %v2250_v35 }
 0x644   :  { %2136 = vmatprep.subr.bf16.mxu1 %v2323_v14 }
 0x6f6   :  { %v701_v52 = vpop.f32.mrf.mxu1 }
 0x6f7   :  { %v702_v53 = vadd.f32 %v701_v52, %v651_v51 }
 0x6f8   :  { %v2100_v54 = vpop.f32.mrf.mxu1 }
 0x6f9   :  { %v708_v55 = vadd.f32 %v702_v53, %v2427_v36 }
 0x6fa   :  { %v704_v56 = vpop.f32.mrf.mxu1 }
 0x6fb   :  { %v705_v59 = vadd.f32 %v704_v56, %v651_v51  ;;  %v710_v60 = vsel %vm42_vm0, %v708_v55, 0.0 }
 0x6fc   :  { %711 = vadd.xlane.f32.xlu0 %v710_v60  ;;  %v2101_v61 = vpop.f32.mrf.mxu1 }
 0x6fd   :  { %v709_v62 = vadd.f32 %v705_v59, %v2429_v37  ;;  %v2245_v37 = vld [vmem:[%s2815_s6 + $0x8] sm:$0xff]  }
 0x6fe   :  { %2103 = vmatpush3.bf16.msra.mxu0 %v2245_v37 }
 0x6ff   :  { %v713_v63 = vsel %vm42_vm0, %v709_v62, 0.0  ;;  %2104 = vmatprep.subr.bf16.mxu0 %v2323_v14 }
 0x700   :  { %714 = vadd.xlane.f32.xlu1 %v713_v63 }
 0x702   :  { %2105 = vmatpush3.bf16.msra.mxu0 %v2246_v8 }
 0x703   :  { %2122 = vmatprep.subr.bf16.mxu0 %v2323_v14 }
 0x785   :  { %v712_v1 = vpop.xlane.xlu0 %711 }
 0x786   :  { %v716_v2 = vmul.f32 0.03125, %v712_v1 }
 0x788   :  { %v718_v3 = vsub.f32 %v708_v55, %v716_v2 }
 0x789   :  { %v715_v4 = vpop.xlane.xlu1 %714 }
 0x78a   :  { %v717_v58 = vmul.f32 0.03125, %v715_v4  ;;  %v720_v5 = vmul.f32 %v718_v3, %v718_v3 }
 0x78c   :  { %v719_v57 = vsub.f32 %v709_v62, %v717_v58  ;;  %v722_v36 = vsel %vm42_vm0, %v720_v5, 0.0  ;;  %v901_v5 = vsub.s32 5, %v2414_v24 }
 0x78d   :  { %723 = vadd.xlane.f32.xlu0 %v722_v36 }
 0x78e   :  { %v721_v49 = vmul.f32 %v719_v57, %v719_v57 }
 0x790   :  { %v725_v7 = vsel %vm42_vm0, %v721_v49, 0.0 }
 0x791   :  { %726 = vadd.xlane.f32.xlu0 %v725_v7 }
 0x816   :  { %v724_v9 = vpop.xlane.xlu0 %723 }
 0x817   :  { %v728_v10 = vmul.f32 0.03125, %v724_v9 }
 0x819   :  { %v730_v11 = vadd.f32 1e-12, %v728_v10 }
 0x81a   :  { %v727_v12 = vpop.xlane.xlu0 %726 }
 0x81b   :  { %2283 = vrsqrt.f32 %v730_v11  ;;  %v729_v13 = vmul.f32 0.03125, %v727_v12 }
 0x81d   :  { %v731_v15 = vadd.f32 1e-12, %v729_v13 }
 0x81f   :  { %2285 = vrsqrt.f32 %v731_v15 }
 0x828   :  { %v2284_v17 = vpop.eup %2283 }
 0x829   :  { %v734_v18 = vmul.f32 %v2284_v17, %v718_v3 }
 0x82b   :  { %v740_v23 = vmul.f32 %v739_v19, %v734_v18 }
 0x82c   :  { %v2286_v21 = vpop.eup %2285 }
 0x82d   :  { %v735_v22 = vmul.f32 %v2286_v21, %v719_v57  ;;  %v746_v28 = vadd.f32 %v745_v26, %v740_v23  ;;  %v902_v57 = vrot.slane %v2439_v39, %v901_v5 }
 0x82f   :  { %v741_v27 = vmul.f32 %v739_v19, %v735_v22 }
 0x831   :  { %v747_v29 = vadd.f32 %v745_v26, %v741_v27 }
 0x833   :  { %v748_v31 = vpack.c.bf16 %v747_v29, %v746_v28 }
 0x835   :  { %2107 = vmatmul.mubr.msk.bf16.vlgmr.msra.gmra.mxu0 %vm42_vm0, %v748_v31  ;;  %v2252_v31 = vld [vmem:[%s2810_s4 + $0x10] sm:$0xff]  }
 0x836   :  { %2126 = vmatprep.mubr.msk.bf16.mxu0 %vm2324_vm1, %v2323_v14 }
 0x8f5   :  { %v802_v41 = vpop.f32.mrf.mxu0 }
 0x8f6   :  { %v803_v42 = vadd.f32 %v802_v41, %v752_v40 }
 0x8f7   :  { %v2108_v43 = vpop.f32.mrf.mxu0 }
 0x8f8   :  { %v811_v44 = vmul.f32 0.044715, %v803_v42  ;;  %v809_v63 = vmul.f32 0.5, %v803_v42 }
 0x8f9   :  { %v805_v45 = vpop.f32.mrf.mxu0 }
 0x8fa   :  { %v813_v46 = vmul.f32 %v811_v44, %v803_v42  ;;  %v806_v47 = vadd.f32 %v805_v45, %v752_v40 }
 0x8fb   :  { %v2109_v48 = vpop.f32.mrf.mxu0 }
 0x8fc   :  { %v815_v50 = vmul.f32 %v813_v46, %v803_v42  ;;  %v812_v51 = vmul.f32 0.044715, %v806_v47  ;;  %v810_v1 = vmul.f32 0.5, %v806_v47  ;;  %v939_v46 = vsub.s32 7, %v2414_v24 }
 0x8fe   :  { %v817_v52 = vadd.f32 %v815_v50, %v803_v42  ;;  %v814_v53 = vmul.f32 %v812_v51, %v806_v47  ;;  %v933_v42 = vsub.s32 6, %v2414_v24  ;;  %v940_v51 = vrot.slane %v2439_v39, %v939_v46 }
 0x900   :  { %v819_v54 = vmul.f32 0.7978846, %v817_v52  ;;  %v816_v55 = vmul.f32 %v814_v53, %v806_v47  ;;  %v934_v45 = vrot.slane %v2439_v39, %v933_v42 }
 0x902   :  { %2287 = vtanh.f32 %v819_v54  ;;  %v818_v56 = vadd.f32 %v816_v55, %v806_v47 }
 0x904   :  { %v820_v59 = vmul.f32 0.7978846, %v818_v56  ;;  %v2634_v56 = vld [vmem:[%s2812_s8 + $0x8] sm:$0xff] }
 0x905   :  { %v973_v39 = vrot.slane %v2634_v56, %v2417_v25 }
 0x906   :  { %2289 = vtanh.f32 %v820_v59 }
 0x90f   :  { %v2288_v60 = vpop.eup %2287 }
 0x910   :  { %v823_v61 = vadd.f32 1.0, %v2288_v60 }
 0x912   :  { %v825_v3 = vmul.f32 %v823_v61, %v809_v63 }
 0x913   :  { %v2290_v62 = vpop.eup %2289 }
 0x914   :  { %v824_v2 = vadd.f32 1.0, %v2290_v62 }
 0x916   :  { %v826_v4 = vmul.f32 %v824_v2, %v810_v1 }
 0x918   :  { %v827_v58 = vpack.c.bf16 %v826_v4, %v825_v3 }
 0x91a   :  { %2119 = vmatmul.mubr.msk.bf16.vlgmr.msra.gmra.mxu1 %vm852_vm5, %v827_v58 }
 0x91b   :  { %2138 = vmatprep.mubr.msk.bf16.mxu1 %vm2324_vm1, %v2323_v14 }
 0x9da   :  { %v890_v36 = vpop.f32.mrf.mxu1 }
 0x9db   :  { %v897_v49 = vadd.f32 %v890_v36, %v746_v28 }
 0x9dc   :  { %v2120_v7 = vpop.f32.mrf.mxu1 }
 0x9dd   :  { %v903_v37 = vadd.f32 %v902_v57, %v897_v49 }
 0x9de   :  { %v893_v8 = vpop.f32.mrf.mxu1 }
 0x9df   :  { %v898_v9 = vadd.f32 %v893_v8, %v747_v29  ;;  %v905_v10 = vsel %vm42_vm0, %v903_v37, 0.0  ;;  %v2251_v29 = vld [vmem:[%s2810_s4 + $0x18] sm:$0xff]  }
 0x9e0   :  { %906 = vadd.xlane.f32.xlu0 %v905_v10  ;;  %v2121_v11 = vpop.f32.mrf.mxu1  ;;  %2123 = vmatpush3.bf16.msra.mxu0 %v2251_v29 }
 0x9e1   :  { %v904_v12 = vadd.f32 %v902_v57, %v898_v9  ;;  %2124 = vmatprep.subr.bf16.mxu0 %v2323_v14 }
 0x9e3   :  { %v908_v13 = vsel %vm42_vm0, %v904_v12, 0.0 }
 0x9e4   :  { %909 = vadd.xlane.f32.xlu1 %v908_v13  ;;  %2125 = vmatpush3.bf16.msra.mxu0 %v2252_v31 }
 0x9e5   :  { %2130 = vmatprep.subr.bf16.mxu0 %v2323_v14 }
 0xa69   :  { %v907_v15 = vpop.xlane.xlu0 %906 }
 0xa6a   :  { %v911_v17 = vmul.f32 0.03125, %v907_v15 }
 0xa6c   :  { %v913_v18 = vsub.f32 %v903_v37, %v911_v17 }
 0xa6d   :  { %v910_v19 = vpop.xlane.xlu1 %909 }
 0xa6e   :  { %v912_v21 = vmul.f32 0.03125, %v910_v19  ;;  %v915_v22 = vmul.f32 %v913_v18, %v913_v18 }
 0xa70   :  { %v914_v23 = vsub.f32 %v904_v12, %v912_v21  ;;  %v917_v26 = vsel %vm42_vm0, %v915_v22, 0.0 }
 0xa71   :  { %918 = vadd.xlane.f32.xlu0 %v917_v26 }
 0xa72   :  { %v916_v27 = vmul.f32 %v914_v23, %v914_v23 }
 0xa74   :  { %v920_v28 = vsel %vm42_vm0, %v916_v27, 0.0 }
 0xa75   :  { %921 = vadd.xlane.f32.xlu1 %v920_v28 }
 0xafa   :  { %v919_v32 = vpop.xlane.xlu0 %918 }
 0xafb   :  { %v923_v33 = vmul.f32 0.03125, %v919_v32 }
 0xafd   :  { %v925_v34 = vadd.f32 1e-12, %v923_v33 }
 0xafe   :  { %v922_v35 = vpop.xlane.xlu1 %921 }
 0xaff   :  { %2291 = vrsqrt.f32 %v925_v34  ;;  %v924_v40 = vmul.f32 0.03125, %v922_v35 }
 0xb01   :  { %v926_v41 = vadd.f32 1e-12, %v924_v40 }
 0xb03   :  { %2293 = vrsqrt.f32 %v926_v41 }
 0xb0c   :  { %v2292_v43 = vpop.eup %2291 }
 0xb0d   :  { %v929_v44 = vmul.f32 %v2292_v43, %v913_v18 }
 0xb0f   :  { %v935_v50 = vmul.f32 %v934_v45, %v929_v44 }
 0xb10   :  { %v2294_v47 = vpop.eup %2293 }
 0xb11   :  { %v930_v48 = vmul.f32 %v2294_v47, %v914_v23  ;;  %v2622_v53 = vadd.f32 %v940_v51, %v935_v50 }
 0xb13   :  { %v936_v52 = vmul.f32 %v934_v45, %v930_v48 }
 0xb15   :  { %v2624_v54 = vadd.f32 %v940_v51, %v936_v52 }
 0xb17   :  { %v969_v55 = vpack.c.bf16 %v2624_v54, %v2622_v53 }
 0xb19   :  { %2127 = vmatmul.mubr.msk.bf16.vlgmr.msra.gmra.mxu0 %vm42_vm0, %v969_v55 }
 0xb1a   :  { %2132 = vmatprep.mubr.msk.bf16.mxu0 %vm2324_vm1, %v2323_v14 }
 0xbd9   :  { %v1023_v59 = vpop.f32.mrf.mxu0 }
 0xbda   :  { %v1024_v60 = vadd.f32 %v1023_v59, %v973_v39 }
 0xbdb   :  { %v2128_v61 = vpop.f32.mrf.mxu0 }
 0xbdc   :  { %v1038_v62 = vpack.c.bf16 %v1024_v60, %v1024_v60 }
 0xbdd   :  { %v1026_v63 = vpop.f32.mrf.mxu0 }
 0xbde   :  { %v1027_v1 = vadd.f32 %v1026_v63, %v973_v39  ;;  %1043 = vrot.lane.b32.xlu1 %v1038_v62, %s2325_s27 }
 0xbdf   :  { %v2129_v2 = vpop.f32.mrf.mxu0 }
 0xbe0   :  { %v2231_v3 = vpack.i.bf16 %v1027_v1, %v1024_v60  ;;  %v2639_v4 = vpack.c.bf16 %v1027_v1, %v1027_v1 }
 0xbe2   :  { %2232 = vrot.lane.b32.xlu0 %v2231_v3, %s2326_s28  ;;  %1092 = vrot.lane.b32.xlu1 %v2639_v4, %s2325_s27 }
 0xc50   :  { %v1044_v58 = vpop.permute.xlu1 %1043 }
 0xc51   :  { %v1049_v25 = vsel %vm181_vm2, %v1044_v58, 0 }
 0xc52   :  { %2131 = vmatpush3.bf16.xpose.msra.mxu0 %v1049_v25 }
 0xc53   :  { %2142 = vmatprep.subr.bf16.mxu0 %v2323_v14 }
 0xc54   :  { %v2233_v57 = vpop.permute.xlu0 %2232  ;;  %v1093_v36 = vpop.permute.xlu1 %1092 }
 0xc55   :  { %v2235_v49 = vunpack.i.h.bf16 %v2233_v57  ;;  %v2234_v7 = vunpack.i.l.bf16 %v2233_v57  ;;  %v1098_v37 = vsel %vm181_vm2, %v1093_v36, 0 }
 0xc56   :  { %2137 = vmatpush3.bf16.xpose.msra.mxu1 %v1098_v37 }
 0xc57   :  { %v2647_v8 = vpack.c.bf16 %v2235_v49, %v2235_v49  ;;  %v2649_v9 = vpack.c.bf16 %v2234_v7, %v2234_v7  ;;  %2148 = vmatprep.subr.bf16.mxu1 %v2323_v14 }
 0xc59   :  { %2133 = vmatmul.mubr.msk.bf16.vlgmr.msra.gmra.mxu0 %vm181_vm2, %v1038_v62  ;;  %1190 = vrot.lane.b32.xlu0 %v2647_v8, %s2325_s27 }
 0xc5a   :  { %1141 = vrot.lane.b32.xlu1 %v2649_v9, %s2325_s27  ;;  %2144 = vmatprep.mubr.msk.bf16.mxu0 %vm2324_vm1, %v2323_v14 }
 0xc5d   :  { %2139 = vmatmul.mubr.msk.bf16.vlgmr.msra.gmra.mxu1 %vm181_vm2, %v2639_v4 }
 0xc5e   :  { %2150 = vmatprep.mubr.msk.bf16.mxu1 %vm2324_vm1, %v2323_v14 }
 0xccb   :  { %v1191_v10 = vpop.permute.xlu0 %1190 }
 0xccc   :  { %v1196_v11 = vsel %vm181_vm2, %v1191_v10, 0  ;;  %v1142_v12 = vpop.permute.xlu1 %1141 }
 0xccd   :  { %v1147_v13 = vsel %vm181_vm2, %v1142_v12, 0  ;;  %2149 = vmatpush3.bf16.xpose.msra.mxu1 %v1196_v11 }
 0xcce   :  { %2143 = vmatpush3.bf16.xpose.msra.mxu0 %v1147_v13  ;;  %2160 = vmatprep.subr.bf16.mxu1 %v2323_v14 }
 0xccf   :  { %2154 = vmatprep.subr.bf16.mxu0 %v2323_v14 }
 0xcd4   :  { %2151 = vmatmul.mubr.msk.bf16.vlgmr.msra.gmra.mxu1 %vm181_vm2, %v2647_v8 }
 0xcd5   :  { %2145 = vmatmul.mubr.msk.bf16.vlgmr.msra.gmra.mxu0 %vm181_vm2, %v2649_v9  ;;  %2162 = vmatprep.mubr.msk.bf16.mxu1 %vm2324_vm1, %v2323_v14 }
 0xcd6   :  { %2156 = vmatprep.mubr.msk.bf16.mxu0 %vm2324_vm1, %v2323_v14 }
 0xd19   :  { %v1085_v15 = vpop.f32.mrf.mxu0 }
 0xd1a   :  { %v1238_v17 = vmul.f32 0.25, %v1085_v15 }
 0xd1b   :  { %v2134_v18 = vpop.f32.mrf.mxu0 }
 0xd1c   :  { %v1242_v19 = vadd.f32 %v2487_v0, %v1238_v17 }
 0xd1d   :  { %v1088_v21 = vpop.f32.mrf.mxu0  ;;  %v1134_v22 = vpop.f32.mrf.mxu1 }
 0xd1e   :  { %v1239_v23 = vmul.f32 0.25, %v1134_v22  ;;  %v1246_v26 = vsel %vm395_vm3, %v1242_v19, -inf }
 0xd1f   :  { %v2140_v27 = vpop.f32.mrf.mxu1  ;;  %1247 = vmax.xlane.f32.xlu1 %v1246_v26  ;;  %v2135_v28 = vpop.f32.mrf.mxu0 }
 0xd20   :  { %v1243_v29 = vadd.f32 %v2493_v6, %v1239_v23 }
 0xd21   :  { %v1137_v31 = vpop.f32.mrf.mxu1 }
 0xd22   :  { %v1249_v32 = vsel %vm395_vm3, %v1243_v29, -inf }
 0xd23   :  { %1250 = vmax.xlane.f32.xlu0 %v1249_v32  ;;  %v2141_v33 = vpop.f32.mrf.mxu1 }
 0xd30   :  { %1294 = vrot.lane.b32.xlu1 %v1038_v62, %s2327_s14 }
 0xd94   :  { %v1232_v34 = vpop.f32.mrf.mxu1 }
 0xd95   :  { %v1183_v35 = vpop.f32.mrf.mxu0  ;;  %v1241_v41 = vmul.f32 0.25, %v1232_v34 }
 0xd96   :  { %v1240_v40 = vmul.f32 0.25, %v1183_v35  ;;  %v2152_v43 = vpop.f32.mrf.mxu1 }
 0xd97   :  { %v2146_v44 = vpop.f32.mrf.mxu0  ;;  %v1245_v52 = vadd.f32 %v2493_v6, %v1241_v41 }
 0xd98   :  { %v1235_v45 = vpop.f32.mrf.mxu1  ;;  %v1244_v47 = vadd.f32 %v2487_v0, %v1240_v40 }
 0xd99   :  { %v1186_v48 = vpop.f32.mrf.mxu0  ;;  %v1255_v39 = vsel %vm395_vm3, %v1245_v52, -inf }
 0xd9a   :  { %v2153_v50 = vpop.f32.mrf.mxu1  ;;  %v1252_v51 = vsel %vm395_vm3, %v1244_v47, -inf }
 0xd9b   :  { %1253 = vmax.xlane.f32.xlu0 %v1252_v51  ;;  %v2147_v55 = vpop.f32.mrf.mxu0  ;;  %v2253_v51 = vld [vmem:[%s2814_s5 + $0x18] sm:$0xff]  }
 0xd9c   :  { %v2254_v55 = vld [vmem:[%s2814_s5 + $0x10] sm:$0xff]  }
 0xd9f   :  { %1256 = vmax.xlane.f32.xlu0 %v1255_v39 }
 0xda8   :  { %v1248_v59 = vpop.xlane.xlu1 %1247 }
 0xda9   :  { %v1258_v60 = vsub.f32 %v1242_v19, %v1248_v59 }
 0xdab   :  { %v1262_v61 = vmul.f32 1.442695, %v1258_v60 }
 0xdac   :  { %v1251_v62 = vpop.xlane.xlu0 %1250  ;;  %v1295_v63 = vpop.permute.xlu1 %1294 }
 0xdad   :  { %2295 = vpow2.f32 %v1262_v61  ;;  %v1259_v1 = vsub.f32 %v1243_v29, %v1251_v62  ;;  %v1300_v0 = vsel %vm449_vm4, %v1295_v63, 0 }
 0xdae   :  { %2155 = vmatpush3.bf16.msra.mxu0 %v1300_v0 }
 0xdaf   :  { %v1264_v2 = vmul.f32 1.442695, %v1259_v1  ;;  %2166 = vmatprep.subr.bf16.mxu0 %v2323_v14 }
 0xdb1   :  { %2297 = vpow2.f32 %v1264_v2 }
 0xdba   :  { %v2296_v6 = vpop.eup %2295 }
 0xdbb   :  { %v1270_v3 = vsel %vm395_vm3, %v2296_v6, 0.0 }
 0xdbc   :  { %1271 = vadd.xlane.f32.xlu1 %v1270_v3 }
 0xdbe   :  { %v2298_v58 = vpop.eup %2297 }
 0xdbf   :  { %v1273_v25 = vsel %vm395_vm3, %v2298_v58, 0.0 }
 0xdc0   :  { %1274 = vadd.xlane.f32.xlu0 %v1273_v25 }
 0xe24   :  { %v1254_v57 = vpop.xlane.xlu0 %1253 }
 0xe25   :  { %v1260_v36 = vsub.f32 %v1244_v47, %v1254_v57 }
 0xe27   :  { %v1266_v49 = vmul.f32 1.442695, %v1260_v36 }
 0xe28   :  { %v1257_v7 = vpop.xlane.xlu0 %1256 }
 0xe29   :  { %2299 = vpow2.f32 %v1266_v49  ;;  %v1261_v37 = vsub.f32 %v1245_v52, %v1257_v7 }
 0xe2b   :  { %v1268_v10 = vmul.f32 1.442695, %v1261_v37 }
 0xe2d   :  { %2301 = vpow2.f32 %v1268_v10  ;;  %v1500_v10 = vrot.slane %v2634_v56, %v2424_v30 }
 0xe36   :  { %v2300_v11 = vpop.eup %2299 }
 0xe37   :  { %v1276_v12 = vsel %vm395_vm3, %v2300_v11, 0.0 }
 0xe38   :  { %1277 = vadd.xlane.f32.xlu1 %v1276_v12 }
 0xe3a   :  { %v2302_v13 = vpop.eup %2301 }
 0xe3b   :  { %v1279_v15 = vsel %vm395_vm3, %v2302_v13, 0.0 }
 0xe3c   :  { %1280 = vadd.xlane.f32.xlu0 %v1279_v15 }
 0xe45   :  { %v1272_v17 = vpop.xlane.xlu1 %1271 }
 0xe46   :  { %2303 = vrcp.f32 %v1272_v17 }
 0xe49   :  { %1390 = vrot.lane.b32.xlu1 %v2649_v9, %s2327_s14  ;;  %v1275_v22 = vpop.xlane.xlu0 %1274 }
 0xe4a   :  { %2305 = vrcp.f32 %v1275_v22 }
 0xe4d   :  { %1438 = vrot.lane.b32.xlu1 %v2647_v8, %s2327_s14 }
 0xe52   :  { %1342 = vrot.lane.b32.xlu0 %v2639_v4, %s2327_s14 }
 0xe53   :  { %v2304_v18 = vpop.eup %2303 }
 0xe54   :  { %v1286_v19 = vmul.f32 %v2304_v18, %v2296_v6 }
 0xe56   :  { %v1290_v21 = vpack.c.bf16 %v1286_v19, %v1286_v19 }
 0xe57   :  { %v2306_v26 = vpop.eup %2305 }
 0xe58   :  { %2157 = vmatmul.mubr.msk.bf16.vlgmr.msra.gmra.mxu0 %vm395_vm3, %v1290_v21  ;;  %v1287_v4 = vmul.f32 %v2306_v26, %v2298_v58 }
 0xe59   :  { %2168 = vmatprep.mubr.msk.bf16.mxu0 %vm2324_vm1, %v2323_v14 }
 0xe5a   :  { %v1291_v32 = vpack.c.bf16 %v1287_v4, %v1287_v4 }
 0xec1   :  { %v1278_v23 = vpop.xlane.xlu1 %1277 }
 0xec2   :  { %2307 = vrcp.f32 %v1278_v23 }
 0xec5   :  { %v1391_v9 = vpop.permute.xlu1 %1390  ;;  %v1281_v27 = vpop.xlane.xlu0 %1280 }
 0xec6   :  { %v1396_v8 = vsel %vm449_vm4, %v1391_v9, 0  ;;  %2309 = vrcp.f32 %v1281_v27 }
 0xec7   :  { %2167 = vmatpush3.bf16.msra.mxu0 %v1396_v8 }
 0xec8   :  { %2178 = vmatprep.subr.bf16.mxu0 %v2323_v14 }
 0xec9   :  { %v1343_v28 = vpop.permute.xlu0 %1342  ;;  %v1439_v31 = vpop.permute.xlu1 %1438 }
 0xeca   :  { %v1348_v29 = vsel %vm449_vm4, %v1343_v28, 0  ;;  %v1444_v33 = vsel %vm449_vm4, %v1439_v31, 0 }
 0xecb   :  { %2161 = vmatpush3.bf16.msra.mxu1 %v1348_v29 }
 0xecc   :  { %2172 = vmatprep.subr.bf16.mxu1 %v2323_v14 }
 0xece   :  { %2163 = vmatmul.mubr.msk.bf16.vlgmr.msra.gmra.mxu1 %vm395_vm3, %v1291_v32  ;;  %v2256_v32 = vld [vmem:[%s2815_s6 + $0x10] sm:$0xff]  }
 0xecf   :  { %v2308_v34 = vpop.eup %2307  ;;  %2173 = vmatpush3.bf16.msra.mxu1 %v1444_v33  ;;  %2174 = vmatprep.mubr.msk.bf16.mxu1 %vm2324_vm1, %v2323_v14 }
 0xed0   :  { %v1288_v35 = vmul.f32 %v2308_v34, %v2300_v11  ;;  %2186 = vmatprep.subr.bf16.mxu1 %v2323_v14 }
 0xed2   :  { %v1292_v40 = vpack.c.bf16 %v1288_v35, %v1288_v35 }
 0xed3   :  { %v2310_v41 = vpop.eup %2309 }
 0xed4   :  { %2169 = vmatmul.mubr.msk.bf16.vlgmr.msra.gmra.mxu0 %vm395_vm3, %v1292_v40  ;;  %v1289_v43 = vmul.f32 %v2310_v41, %v2302_v13 }
 0xed5   :  { %2182 = vmatprep.mubr.msk.bf16.mxu0 %vm2324_vm1, %v2323_v14  ;;  %2179 = vmatpush3.bf16.msra.mxu0 %v2253_v51 }
 0xed6   :  { %v1293_v44 = vpack.c.bf16 %v1289_v43, %v1289_v43  ;;  %2180 = vmatprep.subr.bf16.mxu0 %v2323_v14 }
 0xed8   :  { %2175 = vmatmul.mubr.msk.bf16.vlgmr.msra.gmra.mxu1 %vm395_vm3, %v1293_v44 }
 0xed9   :  { %2190 = vmatprep.mubr.msk.bf16.mxu1 %vm2324_vm1, %v2323_v14  ;;  %2181 = vmatpush3.bf16.msra.mxu0 %v2254_v55 }
 0xeda   :  { %2194 = vmatprep.subr.bf16.mxu0 %v2323_v14 }
 0xf18   :  { %v1336_v45 = vpop.f32.mrf.mxu0 }
 0xf1a   :  { %v2158_v47 = vpop.f32.mrf.mxu0 }
 0xf1b   :  { %v1588_v47 = vrot.slane %v2634_v56, %v738_v16  ;;  %v2257_v16 = vld [vmem:[%s2816_s7 + $0x38] sm:$0xff]  }
 0xf1c   :  { %v1339_v48 = vpop.f32.mrf.mxu0 }
 0xf1e   :  { %v2159_v50 = vpop.f32.mrf.mxu0 }
 0xf8e   :  { %v1384_v52 = vpop.f32.mrf.mxu1 }
 0xf90   :  { %v2164_v39 = vpop.f32.mrf.mxu1 }
 0xf92   :  { %v1387_v59 = vpop.f32.mrf.mxu1 }
 0xf94   :  { %v2165_v60 = vpop.f32.mrf.mxu1  ;;  %v1432_v61 = vpop.f32.mrf.mxu0 }
 0xf96   :  { %v2170_v62 = vpop.f32.mrf.mxu0 }
 0xf97   :  { %v2260_v62 = vld [vmem:[%s2816_s7 + $0x20] sm:$0xff]  }
 0xf98   :  { %v1435_v63 = vpop.f32.mrf.mxu0  ;;  %v1480_v1 = vpop.f32.mrf.mxu1 }
 0xf99   :  { %v2236_v0 = vpack.i.bf16 %v1480_v1, %v1432_v61  ;;  %v2258_v61 = vld [vmem:[%s2816_s7 + $0x30] sm:$0xff]   ;;  %v1601_v63 = vrot.slane %v2634_v56, %v751_v38 }
 0xf9a   :  { %v2171_v2 = vpop.f32.mrf.mxu0  ;;  %v2176_v6 = vpop.f32.mrf.mxu1 }
 0xf9b   :  { %2237 = vrot.lane.b32.xlu1 %v2236_v0, %s2328_s18 }
 0xf9c   :  { %v1483_v3 = vpop.f32.mrf.mxu1 }
 0xf9e   :  { %v2177_v58 = vpop.f32.mrf.mxu1 }
0x100d   :  { %v2238_v25 = vpop.permute.xlu1 %2237 }
0x100e   :  { %v2240_v57 = vunpack.i.h.bf16 %v2238_v25  ;;  %v2239_v36 = vunpack.i.l.bf16 %v2238_v25 }
0x1010   :  { %v1495_v49 = vsel %vm181_vm2, %v1384_v52, %v2240_v57  ;;  %v1494_v7 = vsel %vm181_vm2, %v1336_v45, %v2239_v36  ;;  %v1594_v52 = vrot.slane %v2634_v56, %v744_v20  ;;  %v2259_v20 = vld [vmem:[%s2816_s7 + $0x28] sm:$0xff]  }
0x1011   :  { %v1496_v37 = vpack.c.bf16 %v1495_v49, %v1494_v7 }
0x1013   :  { %2183 = vmatmul.mubr.msk.bf16.vlgmr.msra.gmra.mxu0 %vm42_vm0, %v1496_v37 }
0x1014   :  { %2202 = vmatprep.mubr.msk.bf16.mxu0 %vm2324_vm1, %v2323_v14  ;;  %2195 = vmatpush3.bf16.msra.mxu0 %v2257_v16  ;;  %v1782_v16 = vrot.slane %v2634_v56, %v933_v42 }
0x1015   :  { %2196 = vmatprep.subr.bf16.mxu0 %v2323_v14 }
0x1018   :  { %2197 = vmatpush3.bf16.msra.mxu0 %v2258_v61 }
0x1019   :  { %2198 = vmatprep.subr.bf16.mxu0 %v2323_v14 }
0x101c   :  { %2199 = vmatpush3.bf16.msra.mxu0 %v2259_v20  ;;  %v1788_v20 = vrot.slane %v2634_v56, %v939_v46 }
0x101d   :  { %2200 = vmatprep.subr.bf16.mxu0 %v2323_v14 }
0x1020   :  { %2201 = vmatpush3.bf16.msra.mxu0 %v2260_v62 }
0x10d3   :  { %v1550_v11 = vpop.f32.mrf.mxu0 }
0x10d4   :  { %v1551_v12 = vadd.f32 %v1550_v11, %v1500_v10 }
0x10d5   :  { %v2184_v13 = vpop.f32.mrf.mxu0 }
0x10d6   :  { %v1557_v15 = vadd.f32 %v1551_v12, %v2622_v53 }
0x10d7   :  { %v1553_v17 = vpop.f32.mrf.mxu0 }
0x10d8   :  { %v1554_v18 = vadd.f32 %v1553_v17, %v1500_v10  ;;  %v1559_v19 = vsel %vm42_vm0, %v1557_v15, 0.0 }
0x10d9   :  { %1560 = vadd.xlane.f32.xlu0 %v1559_v19  ;;  %v2185_v21 = vpop.f32.mrf.mxu0 }
0x10da   :  { %v1558_v22 = vadd.f32 %v1554_v18, %v2624_v54  ;;  %v2255_v54 = vld [vmem:[%s2815_s6 + $0x18] sm:$0xff]  }
0x10db   :  { %2187 = vmatpush3.bf16.msra.mxu1 %v2255_v54 }
0x10dc   :  { %v1562_v23 = vsel %vm42_vm0, %v1558_v22, 0.0  ;;  %2188 = vmatprep.subr.bf16.mxu1 %v2323_v14 }
0x10dd   :  { %1563 = vadd.xlane.f32.xlu1 %v1562_v23 }
0x10df   :  { %2189 = vmatpush3.bf16.msra.mxu1 %v2256_v32 }
0x10e0   :  { %2206 = vmatprep.subr.bf16.mxu1 %v2323_v14 }
0x1162   :  { %v1561_v26 = vpop.xlane.xlu0 %1560 }
0x1163   :  { %v1565_v9 = vmul.f32 0.03125, %v1561_v26 }
0x1165   :  { %v1567_v27 = vsub.f32 %v1557_v15, %v1565_v9  ;;  %v1750_v9 = vrot.slane %v2634_v56, %v901_v5 }
0x1166   :  { %v1564_v30 = vpop.xlane.xlu1 %1563 }
0x1167   :  { %v1566_v8 = vmul.f32 0.03125, %v1564_v30  ;;  %v1569_v4 = vmul.f32 %v1567_v27, %v1567_v27 }
0x1169   :  { %v1568_v28 = vsub.f32 %v1558_v22, %v1566_v8  ;;  %v1571_v53 = vsel %vm42_vm0, %v1569_v4, 0.0 }
0x116a   :  { %1572 = vadd.xlane.f32.xlu0 %v1571_v53 }
0x116b   :  { %v1570_v29 = vmul.f32 %v1568_v28, %v1568_v28 }
0x116d   :  { %v1574_v31 = vsel %vm42_vm0, %v1570_v29, 0.0 }
0x116e   :  { %1575 = vadd.xlane.f32.xlu0 %v1574_v31 }
0x11f3   :  { %v1573_v33 = vpop.xlane.xlu0 %1572 }
0x11f4   :  { %v1577_v34 = vmul.f32 0.03125, %v1573_v33 }
0x11f6   :  { %v1579_v35 = vadd.f32 1e-12, %v1577_v34 }
0x11f7   :  { %v1576_v40 = vpop.xlane.xlu0 %1575 }
0x11f8   :  { %2311 = vrsqrt.f32 %v1579_v35  ;;  %v1578_v41 = vmul.f32 0.03125, %v1576_v40 }
0x11fa   :  { %v1580_v43 = vadd.f32 1e-12, %v1578_v41 }
0x11fc   :  { %2313 = vrsqrt.f32 %v1580_v43 }
0x1205   :  { %v2312_v44 = vpop.eup %2311 }
0x1206   :  { %v1583_v45 = vmul.f32 %v2312_v44, %v1567_v27 }
0x1208   :  { %v1589_v51 = vmul.f32 %v1588_v47, %v1583_v45 }
0x1209   :  { %v2314_v48 = vpop.eup %2313 }
0x120a   :  { %v1584_v50 = vmul.f32 %v2314_v48, %v1568_v28  ;;  %v1595_v39 = vadd.f32 %v1594_v52, %v1589_v51  ;;  %v2261_v48 = vld [vmem:[%s2817_s9 + $0x8] sm:$0xff]  }
0x120c   :  { %v1590_v55 = vmul.f32 %v1588_v47, %v1584_v50  ;;  %v2262_v50 = vld [vmem:[%s2817_s9] sm:$0xff]  }
0x120e   :  { %v1596_v59 = vadd.f32 %v1594_v52, %v1590_v55 }
0x1210   :  { %v1597_v60 = vpack.c.bf16 %v1596_v59, %v1595_v39 }
0x1212   :  { %2191 = vmatmul.mubr.msk.bf16.vlgmr.msra.gmra.mxu1 %vm42_vm0, %v1597_v60 }
0x1213   :  { %2210 = vmatprep.mubr.msk.bf16.mxu1 %vm2324_vm1, %v2323_v14  ;;  %2207 = vmatpush3.bf16.msra.mxu1 %v2261_v48 }
0x1214   :  { %2208 = vmatprep.subr.bf16.mxu1 %v2323_v14 }
0x1217   :  { %2209 = vmatpush3.bf16.msra.mxu1 %v2262_v50 }
0x12d2   :  { %v1651_v1 = vpop.f32.mrf.mxu1 }
0x12d3   :  { %v1652_v0 = vadd.f32 %v1651_v1, %v1601_v63 }
0x12d4   :  { %v2192_v2 = vpop.f32.mrf.mxu1 }
0x12d5   :  { %v1660_v6 = vmul.f32 0.044715, %v1652_v0  ;;  %v1658_v18 = vmul.f32 0.5, %v1652_v0  ;;  %v1791_v2 = vld [vmem:[%s2818_s2] sm:$0x1] }
0x12d6   :  { %v1654_v3 = vpop.f32.mrf.mxu1 }
0x12d7   :  { %v1662_v58 = vmul.f32 %v1660_v6, %v1652_v0  ;;  %v1655_v25 = vadd.f32 %v1654_v3, %v1601_v63  ;;  %v1792_v3 = vld [vmem:[%s2818_s2 + $0x1] sm:$0x1] }
0x12d8   :  { %v2193_v57 = vpop.f32.mrf.mxu1 }
0x12d9   :  { %v1664_v36 = vmul.f32 %v1662_v58, %v1652_v0  ;;  %v1661_v49 = vmul.f32 0.044715, %v1655_v25  ;;  %v1659_v19 = vmul.f32 0.5, %v1655_v25 }
0x12db   :  { %v1666_v7 = vadd.f32 %v1664_v36, %v1652_v0  ;;  %v1663_v37 = vmul.f32 %v1661_v49, %v1655_v25 }
0x12dd   :  { %v1668_v10 = vmul.f32 0.7978846, %v1666_v7  ;;  %v1665_v11 = vmul.f32 %v1663_v37, %v1655_v25 }
0x12df   :  { %2315 = vtanh.f32 %v1668_v10  ;;  %v1667_v12 = vadd.f32 %v1665_v11, %v1655_v25  ;;  %v2329_v10 = vmov 1966171168  }
0x12e0   :  { %v1873_v11 = vunpack.c.l.s4 %v2329_v10 }
0x12e1   :  { %v1669_v13 = vmul.f32 0.7978846, %v1667_v12 }
0x12e2   :  { %v1874_v12 = vunpack.c.0.s8 %v1873_v11 }
0x12e3   :  { %2317 = vtanh.f32 %v1669_v13  ;;  %v1969_v13 = vld [vmem:[%s2819_s10] ss:$0 sm:$0xff] }
0x12ec   :  { %v2316_v15 = vpop.eup %2315 }
0x12ed   :  { %v1672_v38 = vadd.f32 1.0, %v2316_v15  ;;  %v1877_v15 = vsub.s32 %v1874_v12, %v2414_v24 }
0x12ef   :  { %v1674_v22 = vmul.f32 %v1672_v38, %v1658_v18 }
0x12f0   :  { %v2318_v17 = vpop.eup %2317 }
0x12f1   :  { %v1673_v21 = vadd.f32 1.0, %v2318_v17 }
0x12f3   :  { %v1675_v23 = vmul.f32 %v1673_v21, %v1659_v19 }
0x12f5   :  { %v1676_v26 = vpack.c.bf16 %v1675_v23, %v1674_v22 }
0x12f7   :  { %2203 = vmatmul.mubr.msk.bf16.vlgmr.msra.gmra.mxu0 %vm852_vm5, %v1676_v26 }
0x13b7   :  { %v1738_v27 = vpop.f32.mrf.mxu0 }
0x13b8   :  { %v1745_v30 = vadd.f32 %v1738_v27, %v1595_v39 }
0x13b9   :  { %v2204_v8 = vpop.f32.mrf.mxu0 }
0x13ba   :  { %v1751_v4 = vadd.f32 %v1750_v9, %v1745_v30 }
0x13bb   :  { %v1741_v28 = vpop.f32.mrf.mxu0 }
0x13bc   :  { %v1746_v53 = vadd.f32 %v1741_v28, %v1596_v59  ;;  %v1753_v29 = vsel %vm42_vm0, %v1751_v4, 0.0 }
0x13bd   :  { %1754 = vadd.xlane.f32.xlu1 %v1753_v29  ;;  %v2205_v31 = vpop.f32.mrf.mxu0 }
0x13be   :  { %v1752_v54 = vadd.f32 %v1750_v9, %v1746_v53 }
0x13c0   :  { %v1756_v32 = vsel %vm42_vm0, %v1752_v54, 0.0 }
0x13c1   :  { %1757 = vadd.xlane.f32.xlu0 %v1756_v32 }
0x1446   :  { %v1755_v33 = vpop.xlane.xlu1 %1754 }
0x1447   :  { %v1759_v34 = vmul.f32 0.03125, %v1755_v33 }
0x1449   :  { %v1761_v35 = vsub.f32 %v1751_v4, %v1759_v34 }
0x144a   :  { %v1758_v40 = vpop.xlane.xlu0 %1757 }
0x144b   :  { %v1760_v41 = vmul.f32 0.03125, %v1758_v40  ;;  %v1763_v5 = vmul.f32 %v1761_v35, %v1761_v35 }
0x144d   :  { %v1762_v43 = vsub.f32 %v1752_v54, %v1760_v41  ;;  %v1765_v44 = vsel %vm42_vm0, %v1763_v5, 0.0 }
0x144e   :  { %1766 = vadd.xlane.f32.xlu1 %v1765_v44 }
0x144f   :  { %v1764_v45 = vmul.f32 %v1762_v43, %v1762_v43 }
0x1451   :  { %v1768_v47 = vsel %vm42_vm0, %v1764_v45, 0.0 }
0x1452   :  { %1769 = vadd.xlane.f32.xlu0 %v1768_v47 }
0x14d7   :  { %v1767_v51 = vpop.xlane.xlu1 %1766 }
0x14d8   :  { %v1771_v52 = vmul.f32 0.03125, %v1767_v51 }
0x14da   :  { %v1773_v55 = vadd.f32 1e-12, %v1771_v52 }
0x14db   :  { %v1770_v39 = vpop.xlane.xlu0 %1769 }
0x14dc   :  { %2319 = vrsqrt.f32 %v1773_v55  ;;  %v1772_v59 = vmul.f32 0.03125, %v1770_v39 }
0x14de   :  { %v1774_v60 = vadd.f32 1e-12, %v1772_v59 }
0x14e0   :  { %2321 = vrsqrt.f32 %v1774_v60 }
0x14e9   :  { %v2320_v61 = vpop.eup %2319 }
0x14ea   :  { %v1777_v62 = vmul.f32 %v2320_v61, %v1761_v35 }
0x14ec   :  { %v1783_v14 = vmul.f32 %v1782_v16, %v1777_v62 }
0x14ed   :  { %v2322_v63 = vpop.eup %2321 }
0x14ee   :  { %v1789_v1 = vadd.f32 %v1788_v20, %v1783_v14  ;;  %v1778_v0 = vmul.f32 %v2322_v63, %v1762_v43 }
0x14f0   :  { %v1784_v6 = vmul.f32 %v1782_v16, %v1778_v0  ;;  %v1793_v58 = vadd.f32 %v1791_v2, %v1789_v1 }
0x14f2   :  { %v1790_v42 = vadd.f32 %v1788_v20, %v1784_v6  ;;  %v1799_v57 = vpack.c.bf16 %v1793_v58, %v1793_v58 }
0x14f4   :  { %v1794_v25 = vadd.f32 %v1792_v3, %v1790_v42  ;;  %v1810_v56 = vunpack.c.l.b16 %v1799_v57 }
0x14f6   :  { %v1800_v36 = vpack.c.bf16 %v1794_v25, %v1794_v25 }
0x14f8   :  { %v1811_v46 = vunpack.c.l.b16 %v1800_v36 }
0x14fa   :  { %v1812_v49 = vrot.slane %v1811_v46, 7 }
0x14fc   :  { %v1814_v7 = vsel %vm1813_vm6, %v1812_v49, %v1810_v56 }
0x14fd   :  { %v1815_v37 = vpack.c.b16 %v1814_v7, %v1814_v7 }
0x14ff   :  { %2211 = vmatmul.mubr.msk.bf16.vlgmr.msra.gmra.mxu1 %vm42_vm0, %v1815_v37 }
0x15bf   :  { %v1865_v38 = vpop.f32.mrf.mxu1 }
0x15c0   :  { %v1866_v17 = vadd.f32 %v1969_v13, %v1865_v38 }
0x15c1   :  { %v2212_v18 = vpop.f32.mrf.mxu1 }
0x15c2   :  { %v1878_v19 = vrot.slane %v1866_v17, %v1877_v15 }
0x15c3   :  { %v1868_v21 = vpop.f32.mrf.mxu1 }
0x15c4   :  { %v1879_v22 = vcombine.high %v1878_v19, %v1878_v19  ;;  %1973 = vst.sshfl [vmem:[%s2820_s11] sm:$0x1 pattern:$0x73625140] %v1878_v19 }
0x15c5   :  { %v2213_v23 = vpop.f32.mrf.mxu1 }
0x15c6   :  { %1974 = vst.sshfl [vmem:[%s2820_s11 + $0x1] sm:$0x1 pattern:$0x73625140] %v1879_v22 }

</bundles_post_ra>
